<compile_context>
chip_gen: v5e
topology: v5e:2x2
jax: 0.10.0
libtpu: 0.0.40
codegen_flags: <defaults>
</compile_context>

<pallas_src>
import jax
import jax.numpy as jnp
from jax import lax
from jax.experimental import pallas as pl
from jax.experimental.pallas import tpu as pltpu


def _round_up(n, m):
    return ((n + m - 1) // m) * m


def _tile_and_pad(n, cap, gran):
    """Pick (tile, padded_n): tile is a multiple of `gran`, padded_n % tile == 0.

    Never degenerates to a whole-array block for awkward n; the axis is padded
    instead (callers mask / slice the pad away), which preserves pipelining and
    bounds per-step VMEM.
    """
    cap = max(gran, (cap // gran) * gran)
    n_pad = _round_up(n, gran)
    if n_pad <= cap:
        return n_pad, n_pad
    t = cap
    while t >= max(gran, cap // 2):
        if n_pad % t == 0:
            return t, n_pad
        t -= gran
    return cap, _round_up(n, cap)


# ----------------------------------------------------------------------------
# Kernel 1a: streaming BN statistics of y = x @ wT + b  (y never hits HBM).
#   x tile : (TM, Din) bf16   wT : (Din, Dout) bf16   b : (1, Dout) f32
#   output : resident (2, Dout) f32 = [sum_y ; sumsq_y]  (one slice per split)
# ----------------------------------------------------------------------------
def _fc_stats_kernel(x_ref, w_ref, b_ref, stat_ref):
    @pl.when(pl.program_id(1) == 0)
    def _():
        stat_ref[...] = jnp.zeros_like(stat_ref)

    y = jnp.dot(x_ref[...], w_ref[...],
                preferred_element_type=jnp.float32) + b_ref[...]
    s = jnp.sum(y, axis=0, keepdims=True)        # (1, Dout)
    sq = jnp.sum(y * y, axis=0, keepdims=True)   # (1, Dout)
    stat_ref[...] += jnp.concatenate([s, sq], axis=0)


# ----------------------------------------------------------------------------
# Kernel 1b: fused Linear + BN(affine) + ReLU.
#   out = relu((x @ wT) * scale + shift),  scale/shift precomputed in wrapper.
# ----------------------------------------------------------------------------
def _fc_affine_relu_kernel(x_ref, w_ref, scale_ref, shift_ref, o_ref):
    acc = jnp.dot(x_ref[...], w_ref[...], preferred_element_type=jnp.float32)
    o_ref[...] = jnp.maximum(acc * scale_ref[...] + shift_ref[...],
                             0.0).astype(o_ref.dtype)


def _split_index_map(inner):
    def idx(s, i):
        return (s * inner + i, 0)
    return idx


def fc_bn_relu(x, w, b, gamma, beta):
    """ReLU(BatchNorm1d_train(Linear(x))), channels-last. Returns f32 (B,N,Dout)."""
    B, N, Din = x.shape
    Dout = w.shape[0]
    M = B * N

    x2 = x.reshape(M, Din).astype(jnp.bfloat16)   # halve streamed DMA, matches ref matmul dtype
    wT = w.T.astype(jnp.bfloat16)                 # (Din, Dout), resident
    b32 = b.astype(jnp.float32)

    tm, M_pad = _tile_and_pad(M, 1024, 16)
    n_pad_rows = M_pad - M
    if n_pad_rows:
        x2 = jnp.pad(x2, ((0, n_pad_rows), (0, 0)))   # zero rows -> y == b exactly
    m_tiles = M_pad // tm

    # v7x megacore: parallel leading axis with per-core partial stats.
    nsplit = 2 if (m_tiles % 2 == 0 and m_tiles >= 2) else 1
    inner = m_tiles // nsplit

    stats = pl.pallas_call(
        _fc_stats_kernel,
        out_shape=jax.ShapeDtypeStruct((nsplit, 2, Dout), jnp.float32),
        grid_spec=pltpu.PrefetchScalarGridSpec(
            num_scalar_prefetch=0,
            grid=(nsplit, inner),
            in_specs=[
                pl.BlockSpec((tm, Din), _split_index_map(inner)),
                pl.BlockSpec((Din, Dout), lambda s, i: (0, 0)),
                pl.BlockSpec((1, Dout), lambda s, i: (0, 0)),
            ],
            out_specs=pl.BlockSpec((None, 2, Dout), lambda s, i: (s, 0, 0)),
        ),
        compiler_params=pltpu.CompilerParams(
            dimension_semantics=("parallel", "arbitrary")),
        cost_estimate=pl.CostEstimate(
            flops=int(2 * M_pad * Din * Dout + 4 * M_pad * Dout),
            transcendentals=0,
            bytes_accessed=int(2 * M_pad * Din + 2 * Din * Dout + 4 * Dout
                               + 4 * nsplit * 2 * Dout)),
    )(x2, wT, b32.reshape(1, Dout))

    # Fold bias + batch-mean/var + gamma/beta into per-channel scale/shift once.
    stat = stats.sum(axis=0)                             # (2, Dout)
    ssum = stat[0] - n_pad_rows * b32                    # remove pad-row contribution
    ssq = stat[1] - n_pad_rows * b32 * b32
    mean = ssum / M
    var = ssq / M - mean * mean                          # biased (BN training mode)
    scale = gamma.astype(jnp.float32) * lax.rsqrt(var + 1e-5)
    shift = (b32 - mean) * scale + beta.astype(jnp.float32)

    out = pl.pallas_call(
        _fc_affine_relu_kernel,
        out_shape=jax.ShapeDtypeStruct((M_pad, Dout), jnp.float32),
        grid_spec=pltpu.PrefetchScalarGridSpec(
            num_scalar_prefetch=0,
            grid=(m_tiles,),
            in_specs=[
                pl.BlockSpec((tm, Din), lambda i: (i, 0)),
                pl.BlockSpec((Din, Dout), lambda i: (0, 0)),
                pl.BlockSpec((1, Dout), lambda i: (0, 0)),
                pl.BlockSpec((1, Dout), lambda i: (0, 0)),
            ],
            out_specs=pl.BlockSpec((tm, Dout), lambda i: (i, 0)),
        ),
        compiler_params=pltpu.CompilerParams(
            dimension_semantics=("parallel",)),
        cost_estimate=pl.CostEstimate(
            flops=int(2 * M_pad * Din * Dout + 3 * M_pad * Dout),
            transcendentals=0,
            bytes_accessed=int(2 * M_pad * Din + 2 * Din * Dout + 8 * Dout
                               + 4 * M_pad * Dout)),
    )(x2, wT, scale.reshape(1, Dout), shift.reshape(1, Dout))

    if n_pad_rows:
        out = out[:M]
    return out.reshape(B, N, Dout)


# ----------------------------------------------------------------------------
# Kernel 2: PointNetFeaturePropagation (mlp=[]) + residual add, tiled over N2.
#   xyz_t   : (1, TN2, 3) f32   target points (one N2 tile)
#   xyz_sT  : (1, 3, N1)  f32   source points, pre-transposed (resident per batch)
#   f_src   : (1, N1, C)  bf16  source features (resident per batch)
#   f_tgt   : (1, TN2, C) f32   residual features (aliased with the output)
# ----------------------------------------------------------------------------
def _interp_add_kernel(xyz_t_ref, xyz_sT_ref, f_src_ref, f_tgt_ref, o_ref):
    xt = xyz_t_ref[0]            # (TN2, 3)
    xsT = xyz_sT_ref[0]          # (3, N1)
    f1 = f_src_ref[0]            # (N1, C) bf16, no per-step cast
    f2 = f_tgt_ref[0]            # (TN2, C)

    # Squared distances on the VPU (no MXU push, no transpose, always >= 0).
    d = ((xt[:, 0:1] - xsT[0:1, :]) ** 2
         + (xt[:, 1:2] - xsT[1:2, :]) ** 2
         + (xt[:, 2:3] - xsT[2:3, :]) ** 2)              # (TN2, N1) f32

    # Three successive per-row minima (3 XLU reductions).
    big = jnp.float32(3.0e38)
    d1 = jnp.min(d, axis=1, keepdims=True)
    dd = jnp.where(d <= d1, big, d)
    d2 = jnp.min(dd, axis=1, keepdims=True)
    dd = jnp.where(dd <= d2, big, dd)
    d3 = jnp.min(dd, axis=1, keepdims=True)

    # EUP reciprocals only on the 3 captured minima (+1 for the row sum):
    # 4*TN2 transcendentals instead of TN2*N1.
    r1 = pl.reciprocal(d1 + 1e-8, approx=True)
    r2 = pl.reciprocal(d2 + 1e-8, approx=True)
    r3 = pl.reciprocal(d3 + 1e-8, approx=True)

    w = (jnp.where(d == d1, r1, 0.0)
         + jnp.where(d == d2, r2, 0.0)
         + jnp.where(d == d3, r3, 0.0))                  # 3-NN inverse-distance weights
    wsum = jnp.sum(w, axis=1, keepdims=True)             # renormalize (tie-safe)
    wmat = w * pl.reciprocal(wsum, approx=True)

    interp = jnp.dot(wmat.astype(jnp.bfloat16), f1,
                     preferred_element_type=jnp.float32)  # (TN2, C)
    o_ref[0] = (interp + f2).astype(o_ref.dtype)


def interpolate_add(xyz_tgt, xyz_src, feats_src, feats_tgt):
    B, N2, _ = xyz_tgt.shape
    _, N1, _ = xyz_src.shape
    C = feats_src.shape[-1]
    xyz_srcT = jnp.swapaxes(xyz_src, 1, 2).astype(jnp.float32)   # (B, 3, N1)
    f_src = feats_src.astype(jnp.bfloat16)     # halves resident DMA + VMEM footprint

    # 128-row target tiles: bounds (tn2, N1) temporaries for v7x's 64 MiB VMEM.
    tn2, N2_pad = _tile_and_pad(N2, 128, 8)
    xt, ft = xyz_tgt, feats_tgt
    if N2_pad != N2:
        xt = jnp.pad(xt, ((0, 0), (0, N2_pad - N2), (0, 0)))
        ft = jnp.pad(ft, ((0, 0), (0, N2_pad - N2), (0, 0)))

    out = pl.pallas_call(
        _interp_add_kernel,
        out_shape=jax.ShapeDtypeStruct((B, N2_pad, C), feats_tgt.dtype),
        grid_spec=pltpu.PrefetchScalarGridSpec(
            num_scalar_prefetch=0,
            grid=(B, N2_pad // tn2),
            in_specs=[
                pl.BlockSpec((1, tn2, 3), lambda b, j: (b, j, 0)),
                pl.BlockSpec((1, 3, N1), lambda b, j: (b, 0, 0)),   # resident over j
                pl.BlockSpec((1, N1, C), lambda b, j: (b, 0, 0)),   # resident over j
                pl.BlockSpec((1, tn2, C), lambda b, j: (b, j, 0)),
            ],
            out_specs=pl.BlockSpec((1, tn2, C), lambda b, j: (b, j, 0)),
        ),
        compiler_params=pltpu.CompilerParams(
            dimension_semantics=("parallel", "parallel")),
        cost_estimate=pl.CostEstimate(
            flops=int(B * (2 * N2_pad * N1 * C + 16 * N2_pad * N1)),
            transcendentals=int(4 * B * N2_pad),
            bytes_accessed=int(B * (4 * 3 * N2_pad + 4 * 3 * N1
                                    + 2 * N1 * C + 8 * N2_pad * C))),
        input_output_aliases={3: 0},   # reuse the feats_tgt buffer for the output
    )(xt, xyz_srcT, f_src, ft)

    if N2_pad != N2:
        out = out[:, :N2, :]
    return out


# ----------------------------------------------------------------------------
# TransitionUp.forward
# ----------------------------------------------------------------------------
@jax.jit
def transition_up(xyz1, points1, xyz2, points2, params):
    feats1 = fc_bn_relu(points1, params["w1"], params["b1"],
                        params["g1"], params["be1"])          # (B, N1, Dout)
    feats2 = fc_bn_relu(points2, params["w2"], params["b2"],
                        params["g2"], params["be2"])          # (B, N2, Dout)
    # fp(xyz2.T, xyz1.T, None, feats1.T).T : interpolate feats1 (at xyz1)
    # onto the xyz2 locations, then residual-add feats2.
    return interpolate_add(xyz2, xyz1, feats1, feats2)        # (B, N2, Dout)


# ----------------------------------------------------------------------------
# Pure-JAX reference (sanity check).  The fc matmul uses the same bf16-operand
# / f32-accumulate convention as the kernels; the interpolation stays in f32.
# ----------------------------------------------------------------------------
def _ref_forward(xyz1, points1, xyz2, points2, params):
    def fc(x, w, b, g, be):
        y = jnp.einsum("bnd,od->bno",
                       x.astype(jnp.bfloat16), w.astype(jnp.bfloat16),
                       preferred_element_type=jnp.float32) + b
        m = y.mean(axis=(0, 1), keepdims=True)
        v = ((y - m) ** 2).mean(axis=(0, 1), keepdims=True)
        return jnp.maximum((y - m) / jnp.sqrt(v + 1e-5) * g + be, 0.0)

    f1 = fc(points1, params["w1"], params["b1"], params["g1"], params["be1"])
    f2 = fc(points2, params["w2"], params["b2"], params["g2"], params["be2"])

    diff = xyz2[:, :, None, :] - xyz1[:, None, :, :]            # (B, N2, N1, 3)
    d = jnp.sum(diff * diff, axis=-1)                           # (B, N2, N1)
    vals, idx = lax.top_k(-d, 3)
    d3 = -vals
    w = 1.0 / (d3 + 1e-8)
    w = w / jnp.sum(w, axis=-1, keepdims=True)
    gathered = jax.vmap(lambda f, i: f[i])(f1, idx)             # (B, N2, 3, C)
    interp = jnp.sum(gathered * w[..., None], axis=2)
    return interp + f2


# ----------------------------------------------------------------------------
# Demo / test
# ----------------------------------------------------------------------------
if __name__ == "__main__":
    B, N1, N2 = 2, 16, 32          # N1: coarse point set, N2: fine point set
    dim1, dim2, dim_out = 32, 16, 32

    key = jax.random.PRNGKey(0)
    k = jax.random.split(key, 8)

    xyz1 = jax.random.uniform(k[0], (B, N1, 3), jnp.float32)
    points1 = jax.random.normal(k[1], (B, N1, dim1), jnp.float32)
    xyz2 = jax.random.uniform(k[2], (B, N2, 3), jnp.float32)
    points2 = jax.random.normal(k[3], (B, N2, dim2), jnp.float32)

    # Deterministic parameter init (shapes follow nn.Linear / nn.BatchNorm1d).
    lim1 = 1.0 / jnp.sqrt(dim1)
    lim2 = 1.0 / jnp.sqrt(dim2)
    params = {
        "w1": jax.random.uniform(k[4], (dim_out, dim1), jnp.float32, -lim1, lim1),
        "b1": jax.random.uniform(k[5], (dim_out,), jnp.float32, -lim1, lim1),
        "g1": jnp.ones((dim_out,), jnp.float32),   # BatchNorm1d default weight
        "be1": jnp.zeros((dim_out,), jnp.float32), # BatchNorm1d default bias
        "w2": jax.random.uniform(k[6], (dim_out, dim2), jnp.float32, -lim2, lim2),
        "b2": jax.random.uniform(k[7], (dim_out,), jnp.float32, -lim2, lim2),
        "g2": jnp.ones((dim_out,), jnp.float32),
        "be2": jnp.zeros((dim_out,), jnp.float32),
    }

    out = transition_up(xyz1, points1, xyz2, points2, params)
    out = jax.block_until_ready(out)
    assert out.shape == (B, N2, dim_out), out.shape

    ref = _ref_forward(xyz1, points1, xyz2, points2, params)
    assert jnp.allclose(out, ref, rtol=2e-2, atol=2e-2), \
        float(jnp.max(jnp.abs(out - ref)))

    print("KERNEL_OK")
</pallas_src>

<mosaic_0001>
module attributes {stable_mosaic.version = 11 : i64} {
  func.func @_fc_stats_kernel(%arg0: i32, %arg1: i32, %arg2: memref<64x16xbf16, #tpu.memory_space<vmem>>, %arg3: memref<16x32xbf16, #tpu.memory_space<vmem>>, %arg4: memref<1x32xf32, #tpu.memory_space<vmem>>, %arg5: memref<1x2x32xf32, #tpu.memory_space<vmem>>) attributes {dimension_semantics = [#tpu.dimension_semantics<parallel>, #tpu.dimension_semantics<arbitrary>], iteration_bounds = array<i64: 1, 1>, scalar_prefetch = 0 : i64, scratch_operands = 0 : i64, tpu.core_type = #tpu.core_type<tc>, window_params = [{transform_indices = @transform_0, window_bounds = array<i64: 64, 16>}, {pipeline_mode = #tpu.pipeline_mode<synchronous>, transform_indices = @transform_1, window_bounds = array<i64: 16, 32>}, {pipeline_mode = #tpu.pipeline_mode<synchronous>, transform_indices = @transform_2, window_bounds = array<i64: 1, 32>}, {transform_indices = @transform_3, window_bounds = array<i64: 1, 2, 32>}]} {
    %c0_i32 = arith.constant 0 : i32
    %0 = arith.cmpi eq, %arg1, %c0_i32 : i32
    %1 = arith.extui %0 : i1 to i32
    %c0_i32_0 = arith.constant 0 : i32
    %2 = arith.cmpi ne, %1, %c0_i32_0 : i32
    scf.if %2 {
      %cst_14 = arith.constant 0.000000e+00 : f32
      %21 = vector.broadcast %cst_14 : f32 to vector<2x32xf32>
      %c0_15 = arith.constant 0 : index
      %c0_16 = arith.constant 0 : index
      %c0_17 = arith.constant 0 : index
      %22 = vector.load %arg5[%c0_15, %c0_16, %c0_17] : memref<1x2x32xf32, #tpu.memory_space<vmem>>, vector<1x2x32xf32>
      %23 = vector.shape_cast %22 : vector<1x2x32xf32> to vector<2x32xf32>
      %24 = vector.shape_cast %21 : vector<2x32xf32> to vector<1x2x32xf32>
      tpu.vector_store %arg5[%c0_15, %c0_16, %c0_17], %24 {strides = array<i32>} : memref<1x2x32xf32, #tpu.memory_space<vmem>>, vector<1x2x32xf32>,
    } else {
    }
    %c0 = arith.constant 0 : index
    %c0_1 = arith.constant 0 : index
    %3 = vector.load %arg2[%c0, %c0_1] : memref<64x16xbf16, #tpu.memory_space<vmem>>, vector<64x16xbf16>
    %c0_2 = arith.constant 0 : index
    %c0_3 = arith.constant 0 : index
    %4 = vector.load %arg3[%c0_2, %c0_3] : memref<16x32xbf16, #tpu.memory_space<vmem>>, vector<16x32xbf16>
    %cst = arith.constant dense<0.000000e+00> : vector<64x32xf32>
    %5 = tpu.matmul %3, %4, %cst {dimension_numbers = #tpu.dot_dimension_numbers<[1], [0], [0], [1], [0, 0, 1, 1], [], []>} : vector<64x16xbf16>, vector<16x32xbf16>, vector<64x32xf32> -> vector<64x32xf32>
    %c0_4 = arith.constant 0 : index
    %c0_5 = arith.constant 0 : index
    %6 = vector.load %arg4[%c0_4, %c0_5] : memref<1x32xf32, #tpu.memory_space<vmem>>, vector<1x32xf32>
    %7 = vector.broadcast %6 : vector<1x32xf32> to vector<64x32xf32>
    %8 = arith.addf %5, %7 : vector<64x32xf32>
    %cst_6 = arith.constant dense<0.000000e+00> : vector<32xf32>
    %9 = vector.multi_reduction <add>, %8, %cst_6 [0] : vector<64x32xf32> to vector<32xf32>
    %10 = vector.shape_cast %9 : vector<32xf32> to vector<1x32xf32>
    %11 = arith.mulf %8, %8 : vector<64x32xf32>
    %cst_7 = arith.constant dense<0.000000e+00> : vector<32xf32>
    %12 = vector.multi_reduction <add>, %11, %cst_7 [0] : vector<64x32xf32> to vector<32xf32>
    %13 = vector.shape_cast %12 : vector<32xf32> to vector<1x32xf32>
    %c0_8 = arith.constant 0 : index
    %c0_9 = arith.constant 0 : index
    %c0_10 = arith.constant 0 : index
    %14 = vector.load %arg5[%c0_8, %c0_9, %c0_10] : memref<1x2x32xf32, #tpu.memory_space<vmem>>, vector<1x2x32xf32>
    %15 = vector.shape_cast %14 : vector<1x2x32xf32> to vector<2x32xf32>
    %16 = tpu.concatenate %10, %13 in 0 : vector<1x32xf32>, vector<1x32xf32> -> vector<2x32xf32>
    %17 = arith.addf %15, %16 : vector<2x32xf32>
    %c0_11 = arith.constant 0 : index
    %c0_12 = arith.constant 0 : index
    %c0_13 = arith.constant 0 : index
    %18 = vector.load %arg5[%c0_11, %c0_12, %c0_13] : memref<1x2x32xf32, #tpu.memory_space<vmem>>, vector<1x2x32xf32>
    %19 = vector.shape_cast %18 : vector<1x2x32xf32> to vector<2x32xf32>
    %20 = vector.shape_cast %17 : vector<2x32xf32> to vector<1x2x32xf32>
    tpu.vector_store %arg5[%c0_11, %c0_12, %c0_13], %20 {strides = array<i32>} : memref<1x2x32xf32, #tpu.memory_space<vmem>>, vector<1x2x32xf32>,
    return
  }
  func.func @transform_0(%arg0: i32, %arg1: i32) -> (i32, i32) {
    %c1_i32 = arith.constant 1 : i32
    %0 = arith.muli %arg0, %c1_i32 : i32
    %1 = arith.addi %0, %arg1 : i32
    %c0_i32 = arith.constant 0 : i32
    %c0_i32_0 = arith.constant 0 : i32
    return %1, %c0_i32 : i32, i32
  }
  func.func @transform_1(%arg0: i32, %arg1: i32) -> (i32, i32) {
    %c0_i32 = arith.constant 0 : i32
    %c0_i32_0 = arith.constant 0 : i32
    %c0_i32_1 = arith.constant 0 : i32
    return %c0_i32, %c0_i32_0 : i32, i32
  }
  func.func @transform_2(%arg0: i32, %arg1: i32) -> (i32, i32) {
    %c0_i32 = arith.constant 0 : i32
    %c0_i32_0 = arith.constant 0 : i32
    %c0_i32_1 = arith.constant 0 : i32
    return %c0_i32, %c0_i32_0 : i32, i32
  }
  func.func @transform_3(%arg0: i32, %arg1: i32) -> (i32, i32, i32) {
    %c0_i32 = arith.constant 0 : i32
    %c0_i32_0 = arith.constant 0 : i32
    %c0_i32_1 = arith.constant 0 : i32
    return %arg0, %c0_i32, %c0_i32_0 : i32, i32, i32
  }
}

module attributes {stable_mosaic.version = 11 : i64} {
  func.func @_fc_stats_kernel(%arg0: i32, %arg1: i32, %arg2: memref<32x32xbf16, #tpu.memory_space<vmem>>, %arg3: memref<32x32xbf16, #tpu.memory_space<vmem>>, %arg4: memref<1x32xf32, #tpu.memory_space<vmem>>, %arg5: memref<1x2x32xf32, #tpu.memory_space<vmem>>) attributes {dimension_semantics = [#tpu.dimension_semantics<parallel>, #tpu.dimension_semantics<arbitrary>], iteration_bounds = array<i64: 1, 1>, scalar_prefetch = 0 : i64, scratch_operands = 0 : i64, tpu.core_type = #tpu.core_type<tc>, window_params = [{transform_indices = @transform_0, window_bounds = array<i64: 32, 32>}, {pipeline_mode = #tpu.pipeline_mode<synchronous>, transform_indices = @transform_1, window_bounds = array<i64: 32, 32>}, {pipeline_mode = #tpu.pipeline_mode<synchronous>, transform_indices = @transform_2, window_bounds = array<i64: 1, 32>}, {transform_indices = @transform_3, window_bounds = array<i64: 1, 2, 32>}]} {
    %c0_i32 = arith.constant 0 : i32
    %0 = arith.cmpi eq, %arg1, %c0_i32 : i32
    %1 = arith.extui %0 : i1 to i32
    %c0_i32_0 = arith.constant 0 : i32
    %2 = arith.cmpi ne, %1, %c0_i32_0 : i32
    scf.if %2 {
      %cst_14 = arith.constant 0.000000e+00 : f32
      %21 = vector.broadcast %cst_14 : f32 to vector<2x32xf32>
      %c0_15 = arith.constant 0 : index
      %c0_16 = arith.constant 0 : index
      %c0_17 = arith.constant 0 : index
      %22 = vector.load %arg5[%c0_15, %c0_16, %c0_17] : memref<1x2x32xf32, #tpu.memory_space<vmem>>, vector<1x2x32xf32>
      %23 = vector.shape_cast %22 : vector<1x2x32xf32> to vector<2x32xf32>
      %24 = vector.shape_cast %21 : vector<2x32xf32> to vector<1x2x32xf32>
      tpu.vector_store %arg5[%c0_15, %c0_16, %c0_17], %24 {strides = array<i32>} : memref<1x2x32xf32, #tpu.memory_space<vmem>>, vector<1x2x32xf32>,
    } else {
    }
    %c0 = arith.constant 0 : index
    %c0_1 = arith.constant 0 : index
    %3 = vector.load %arg2[%c0, %c0_1] : memref<32x32xbf16, #tpu.memory_space<vmem>>, vector<32x32xbf16>
    %c0_2 = arith.constant 0 : index
    %c0_3 = arith.constant 0 : index
    %4 = vector.load %arg3[%c0_2, %c0_3] : memref<32x32xbf16, #tpu.memory_space<vmem>>, vector<32x32xbf16>
    %cst = arith.constant dense<0.000000e+00> : vector<32x32xf32>
    %5 = tpu.matmul %3, %4, %cst {dimension_numbers = #tpu.dot_dimension_numbers<[1], [0], [0], [1], [0, 0, 1, 1], [], []>} : vector<32x32xbf16>, vector<32x32xbf16>, vector<32x32xf32> -> vector<32x32xf32>
    %c0_4 = arith.constant 0 : index
    %c0_5 = arith.constant 0 : index
    %6 = vector.load %arg4[%c0_4, %c0_5] : memref<1x32xf32, #tpu.memory_space<vmem>>, vector<1x32xf32>
    %7 = vector.broadcast %6 : vector<1x32xf32> to vector<32x32xf32>
    %8 = arith.addf %5, %7 : vector<32x32xf32>
    %cst_6 = arith.constant dense<0.000000e+00> : vector<32xf32>
    %9 = vector.multi_reduction <add>, %8, %cst_6 [0] : vector<32x32xf32> to vector<32xf32>
    %10 = vector.shape_cast %9 : vector<32xf32> to vector<1x32xf32>
    %11 = arith.mulf %8, %8 : vector<32x32xf32>
    %cst_7 = arith.constant dense<0.000000e+00> : vector<32xf32>
    %12 = vector.multi_reduction <add>, %11, %cst_7 [0] : vector<32x32xf32> to vector<32xf32>
    %13 = vector.shape_cast %12 : vector<32xf32> to vector<1x32xf32>
    %c0_8 = arith.constant 0 : index
    %c0_9 = arith.constant 0 : index
    %c0_10 = arith.constant 0 : index
    %14 = vector.load %arg5[%c0_8, %c0_9, %c0_10] : memref<1x2x32xf32, #tpu.memory_space<vmem>>, vector<1x2x32xf32>
    %15 = vector.shape_cast %14 : vector<1x2x32xf32> to vector<2x32xf32>
    %16 = tpu.concatenate %10, %13 in 0 : vector<1x32xf32>, vector<1x32xf32> -> vector<2x32xf32>
    %17 = arith.addf %15, %16 : vector<2x32xf32>
    %c0_11 = arith.constant 0 : index
    %c0_12 = arith.constant 0 : index
    %c0_13 = arith.constant 0 : index
    %18 = vector.load %arg5[%c0_11, %c0_12, %c0_13] : memref<1x2x32xf32, #tpu.memory_space<vmem>>, vector<1x2x32xf32>
    %19 = vector.shape_cast %18 : vector<1x2x32xf32> to vector<2x32xf32>
    %20 = vector.shape_cast %17 : vector<2x32xf32> to vector<1x2x32xf32>
    tpu.vector_store %arg5[%c0_11, %c0_12, %c0_13], %20 {strides = array<i32>} : memref<1x2x32xf32, #tpu.memory_space<vmem>>, vector<1x2x32xf32>,
    return
  }
  func.func @transform_0(%arg0: i32, %arg1: i32) -> (i32, i32) {
    %c1_i32 = arith.constant 1 : i32
    %0 = arith.muli %arg0, %c1_i32 : i32
    %1 = arith.addi %0, %arg1 : i32
    %c0_i32 = arith.constant 0 : i32
    %c0_i32_0 = arith.constant 0 : i32
    return %1, %c0_i32 : i32, i32
  }
  func.func @transform_1(%arg0: i32, %arg1: i32) -> (i32, i32) {
    %c0_i32 = arith.constant 0 : i32
    %c0_i32_0 = arith.constant 0 : i32
    %c0_i32_1 = arith.constant 0 : i32
    return %c0_i32, %c0_i32_0 : i32, i32
  }
  func.func @transform_2(%arg0: i32, %arg1: i32) -> (i32, i32) {
    %c0_i32 = arith.constant 0 : i32
    %c0_i32_0 = arith.constant 0 : i32
    %c0_i32_1 = arith.constant 0 : i32
    return %c0_i32, %c0_i32_0 : i32, i32
  }
  func.func @transform_3(%arg0: i32, %arg1: i32) -> (i32, i32, i32) {
    %c0_i32 = arith.constant 0 : i32
    %c0_i32_0 = arith.constant 0 : i32
    %c0_i32_1 = arith.constant 0 : i32
    return %arg0, %c0_i32, %c0_i32_0 : i32, i32, i32
  }
}

module attributes {stable_mosaic.version = 11 : i64} {
  func.func @_fc_affine_relu_kernel(%arg0: i32, %arg1: memref<32x32xbf16, #tpu.memory_space<vmem>>, %arg2: memref<32x32xbf16, #tpu.memory_space<vmem>>, %arg3: memref<1x32xf32, #tpu.memory_space<vmem>>, %arg4: memref<1x32xf32, #tpu.memory_space<vmem>>, %arg5: memref<32x32xf32, #tpu.memory_space<vmem>>) attributes {dimension_semantics = [#tpu.dimension_semantics<parallel>], iteration_bounds = array<i64: 1>, scalar_prefetch = 0 : i64, scratch_operands = 0 : i64, tpu.core_type = #tpu.core_type<tc>, window_params = [{transform_indices = @transform_0, window_bounds = array<i64: 32, 32>}, {pipeline_mode = #tpu.pipeline_mode<synchronous>, transform_indices = @transform_1, window_bounds = array<i64: 32, 32>}, {pipeline_mode = #tpu.pipeline_mode<synchronous>, transform_indices = @transform_2, window_bounds = array<i64: 1, 32>}, {pipeline_mode = #tpu.pipeline_mode<synchronous>, transform_indices = @transform_3, window_bounds = array<i64: 1, 32>}, {transform_indices = @transform_4, window_bounds = array<i64: 32, 32>}]} {
    %c0 = arith.constant 0 : index
    %c0_0 = arith.constant 0 : index
    %0 = vector.load %arg1[%c0, %c0_0] : memref<32x32xbf16, #tpu.memory_space<vmem>>, vector<32x32xbf16>
    %c0_1 = arith.constant 0 : index
    %c0_2 = arith.constant 0 : index
    %1 = vector.load %arg2[%c0_1, %c0_2] : memref<32x32xbf16, #tpu.memory_space<vmem>>, vector<32x32xbf16>
    %cst = arith.constant dense<0.000000e+00> : vector<32x32xf32>
    %2 = tpu.matmul %0, %1, %cst {dimension_numbers = #tpu.dot_dimension_numbers<[1], [0], [0], [1], [0, 0, 1, 1], [], []>} : vector<32x32xbf16>, vector<32x32xbf16>, vector<32x32xf32> -> vector<32x32xf32>
    %c0_3 = arith.constant 0 : index
    %c0_4 = arith.constant 0 : index
    %3 = vector.load %arg3[%c0_3, %c0_4] : memref<1x32xf32, #tpu.memory_space<vmem>>, vector<1x32xf32>
    %4 = vector.broadcast %3 : vector<1x32xf32> to vector<32x32xf32>
    %5 = arith.mulf %2, %4 : vector<32x32xf32>
    %c0_5 = arith.constant 0 : index
    %c0_6 = arith.constant 0 : index
    %6 = vector.load %arg4[%c0_5, %c0_6] : memref<1x32xf32, #tpu.memory_space<vmem>>, vector<1x32xf32>
    %7 = vector.broadcast %6 : vector<1x32xf32> to vector<32x32xf32>
    %8 = arith.addf %5, %7 : vector<32x32xf32>
    %cst_7 = arith.constant 0.000000e+00 : f32
    %9 = vector.broadcast %cst_7 : f32 to vector<32x32xf32>
    %10 = arith.maximumf %8, %9 : vector<32x32xf32>
    %c0_8 = arith.constant 0 : index
    %c0_9 = arith.constant 0 : index
    %11 = vector.load %arg5[%c0_8, %c0_9] : memref<32x32xf32, #tpu.memory_space<vmem>>, vector<32x32xf32>
    tpu.vector_store %arg5[%c0_8, %c0_9], %10 {strides = array<i32>} : memref<32x32xf32, #tpu.memory_space<vmem>>, vector<32x32xf32>,
    return
  }
  func.func @transform_0(%arg0: i32) -> (i32, i32) {
    %c0_i32 = arith.constant 0 : i32
    %c0_i32_0 = arith.constant 0 : i32
    return %arg0, %c0_i32 : i32, i32
  }
  func.func @transform_1(%arg0: i32) -> (i32, i32) {
    %c0_i32 = arith.constant 0 : i32
    %c0_i32_0 = arith.constant 0 : i32
    %c0_i32_1 = arith.constant 0 : i32
    return %c0_i32, %c0_i32_0 : i32, i32
  }
  func.func @transform_2(%arg0: i32) -> (i32, i32) {
    %c0_i32 = arith.constant 0 : i32
    %c0_i32_0 = arith.constant 0 : i32
    %c0_i32_1 = arith.constant 0 : i32
    return %c0_i32, %c0_i32_0 : i32, i32
  }
  func.func @transform_3(%arg0: i32) -> (i32, i32) {
    %c0_i32 = arith.constant 0 : i32
    %c0_i32_0 = arith.constant 0 : i32
    %c0_i32_1 = arith.constant 0 : i32
    return %c0_i32, %c0_i32_0 : i32, i32
  }
  func.func @transform_4(%arg0: i32) -> (i32, i32) {
    %c0_i32 = arith.constant 0 : i32
    %c0_i32_0 = arith.constant 0 : i32
    return %arg0, %c0_i32 : i32, i32
  }
}

module attributes {stable_mosaic.version = 11 : i64} {
  func.func @_fc_affine_relu_kernel(%arg0: i32, %arg1: memref<64x16xbf16, #tpu.memory_space<vmem>>, %arg2: memref<16x32xbf16, #tpu.memory_space<vmem>>, %arg3: memref<1x32xf32, #tpu.memory_space<vmem>>, %arg4: memref<1x32xf32, #tpu.memory_space<vmem>>, %arg5: memref<64x32xf32, #tpu.memory_space<vmem>>) attributes {dimension_semantics = [#tpu.dimension_semantics<parallel>], iteration_bounds = array<i64: 1>, scalar_prefetch = 0 : i64, scratch_operands = 0 : i64, tpu.core_type = #tpu.core_type<tc>, window_params = [{transform_indices = @transform_0, window_bounds = array<i64: 64, 16>}, {pipeline_mode = #tpu.pipeline_mode<synchronous>, transform_indices = @transform_1, window_bounds = array<i64: 16, 32>}, {pipeline_mode = #tpu.pipeline_mode<synchronous>, transform_indices = @transform_2, window_bounds = array<i64: 1, 32>}, {pipeline_mode = #tpu.pipeline_mode<synchronous>, transform_indices = @transform_3, window_bounds = array<i64: 1, 32>}, {transform_indices = @transform_4, window_bounds = array<i64: 64, 32>}]} {
    %c0 = arith.constant 0 : index
    %c0_0 = arith.constant 0 : index
    %0 = vector.load %arg1[%c0, %c0_0] : memref<64x16xbf16, #tpu.memory_space<vmem>>, vector<64x16xbf16>
    %c0_1 = arith.constant 0 : index
    %c0_2 = arith.constant 0 : index
    %1 = vector.load %arg2[%c0_1, %c0_2] : memref<16x32xbf16, #tpu.memory_space<vmem>>, vector<16x32xbf16>
    %cst = arith.constant dense<0.000000e+00> : vector<64x32xf32>
    %2 = tpu.matmul %0, %1, %cst {dimension_numbers = #tpu.dot_dimension_numbers<[1], [0], [0], [1], [0, 0, 1, 1], [], []>} : vector<64x16xbf16>, vector<16x32xbf16>, vector<64x32xf32> -> vector<64x32xf32>
    %c0_3 = arith.constant 0 : index
    %c0_4 = arith.constant 0 : index
    %3 = vector.load %arg3[%c0_3, %c0_4] : memref<1x32xf32, #tpu.memory_space<vmem>>, vector<1x32xf32>
    %4 = vector.broadcast %3 : vector<1x32xf32> to vector<64x32xf32>
    %5 = arith.mulf %2, %4 : vector<64x32xf32>
    %c0_5 = arith.constant 0 : index
    %c0_6 = arith.constant 0 : index
    %6 = vector.load %arg4[%c0_5, %c0_6] : memref<1x32xf32, #tpu.memory_space<vmem>>, vector<1x32xf32>
    %7 = vector.broadcast %6 : vector<1x32xf32> to vector<64x32xf32>
    %8 = arith.addf %5, %7 : vector<64x32xf32>
    %cst_7 = arith.constant 0.000000e+00 : f32
    %9 = vector.broadcast %cst_7 : f32 to vector<64x32xf32>
    %10 = arith.maximumf %8, %9 : vector<64x32xf32>
    %c0_8 = arith.constant 0 : index
    %c0_9 = arith.constant 0 : index
    %11 = vector.load %arg5[%c0_8, %c0_9] : memref<64x32xf32, #tpu.memory_space<vmem>>, vector<64x32xf32>
    tpu.vector_store %arg5[%c0_8, %c0_9], %10 {strides = array<i32>} : memref<64x32xf32, #tpu.memory_space<vmem>>, vector<64x32xf32>,
    return
  }
  func.func @transform_0(%arg0: i32) -> (i32, i32) {
    %c0_i32 = arith.constant 0 : i32
    %c0_i32_0 = arith.constant 0 : i32
    return %arg0, %c0_i32 : i32, i32
  }
  func.func @transform_1(%arg0: i32) -> (i32, i32) {
    %c0_i32 = arith.constant 0 : i32
    %c0_i32_0 = arith.constant 0 : i32
    %c0_i32_1 = arith.constant 0 : i32
    return %c0_i32, %c0_i32_0 : i32, i32
  }
  func.func @transform_2(%arg0: i32) -> (i32, i32) {
    %c0_i32 = arith.constant 0 : i32
    %c0_i32_0 = arith.constant 0 : i32
    %c0_i32_1 = arith.constant 0 : i32
    return %c0_i32, %c0_i32_0 : i32, i32
  }
  func.func @transform_3(%arg0: i32) -> (i32, i32) {
    %c0_i32 = arith.constant 0 : i32
    %c0_i32_0 = arith.constant 0 : i32
    %c0_i32_1 = arith.constant 0 : i32
    return %c0_i32, %c0_i32_0 : i32, i32
  }
  func.func @transform_4(%arg0: i32) -> (i32, i32) {
    %c0_i32 = arith.constant 0 : i32
    %c0_i32_0 = arith.constant 0 : i32
    return %arg0, %c0_i32 : i32, i32
  }
}

module attributes {stable_mosaic.version = 11 : i64} {
  func.func @_interp_add_kernel(%arg0: i32, %arg1: i32, %arg2: memref<1x32x3xf32, #tpu.memory_space<vmem>>, %arg3: memref<1x3x16xf32, #tpu.memory_space<vmem>>, %arg4: memref<1x16x32xbf16, #tpu.memory_space<vmem>>, %arg5: memref<1x32x32xf32, #tpu.memory_space<vmem>>, %arg6: memref<1x32x32xf32, #tpu.memory_space<vmem>>) attributes {dimension_semantics = [#tpu.dimension_semantics<parallel>, #tpu.dimension_semantics<parallel>], iteration_bounds = array<i64: 2, 1>, scalar_prefetch = 0 : i64, scratch_operands = 0 : i64, tpu.core_type = #tpu.core_type<tc>, window_params = [{transform_indices = @transform_0, window_bounds = array<i64: 1, 32, 3>}, {transform_indices = @transform_1, window_bounds = array<i64: 1, 3, 16>}, {transform_indices = @transform_2, window_bounds = array<i64: 1, 16, 32>}, {transform_indices = @transform_3, window_bounds = array<i64: 1, 32, 32>}, {transform_indices = @transform_4, window_bounds = array<i64: 1, 32, 32>}]} {
    %c0 = arith.constant 0 : index
    %c0_0 = arith.constant 0 : index
    %c0_1 = arith.constant 0 : index
    %0 = vector.load %arg2[%c0, %c0_0, %c0_1] : memref<1x32x3xf32, #tpu.memory_space<vmem>>, vector<1x32x3xf32>
    %1 = vector.shape_cast %0 : vector<1x32x3xf32> to vector<32x3xf32>
    %c0_2 = arith.constant 0 : index
    %c0_3 = arith.constant 0 : index
    %c0_4 = arith.constant 0 : index
    %2 = vector.load %arg3[%c0_2, %c0_3, %c0_4] : memref<1x3x16xf32, #tpu.memory_space<vmem>>, vector<1x3x16xf32>
    %3 = vector.shape_cast %2 : vector<1x3x16xf32> to vector<3x16xf32>
    %c0_5 = arith.constant 0 : index
    %c0_6 = arith.constant 0 : index
    %c0_7 = arith.constant 0 : index
    %4 = vector.load %arg4[%c0_5, %c0_6, %c0_7] : memref<1x16x32xbf16, #tpu.memory_space<vmem>>, vector<1x16x32xbf16>
    %5 = vector.shape_cast %4 : vector<1x16x32xbf16> to vector<16x32xbf16>
    %c0_8 = arith.constant 0 : index
    %c0_9 = arith.constant 0 : index
    %c0_10 = arith.constant 0 : index
    %6 = vector.load %arg5[%c0_8, %c0_9, %c0_10] : memref<1x32x32xf32, #tpu.memory_space<vmem>>, vector<1x32x32xf32>
    %7 = vector.shape_cast %6 : vector<1x32x32xf32> to vector<32x32xf32>
    %8 = vector.extract_strided_slice %1 {offsets = [0, 0], sizes = [32, 1], strides = [1, 1]} : vector<32x3xf32> to vector<32x1xf32>
    %9 = vector.extract_strided_slice %3 {offsets = [0, 0], sizes = [1, 16], strides = [1, 1]} : vector<3x16xf32> to vector<1x16xf32>
    %10 = vector.broadcast %8 : vector<32x1xf32> to vector<32x16xf32>
    %11 = vector.broadcast %9 : vector<1x16xf32> to vector<32x16xf32>
    %12 = arith.subf %10, %11 : vector<32x16xf32>
    %13 = arith.mulf %12, %12 : vector<32x16xf32>
    %14 = vector.extract_strided_slice %1 {offsets = [0, 1], sizes = [32, 1], strides = [1, 1]} : vector<32x3xf32> to vector<32x1xf32>
    %15 = vector.extract_strided_slice %3 {offsets = [1, 0], sizes = [1, 16], strides = [1, 1]} : vector<3x16xf32> to vector<1x16xf32>
    %16 = vector.broadcast %14 : vector<32x1xf32> to vector<32x16xf32>
    %17 = vector.broadcast %15 : vector<1x16xf32> to vector<32x16xf32>
    %18 = arith.subf %16, %17 : vector<32x16xf32>
    %19 = arith.mulf %18, %18 : vector<32x16xf32>
    %20 = arith.addf %13, %19 : vector<32x16xf32>
    %21 = vector.extract_strided_slice %1 {offsets = [0, 2], sizes = [32, 1], strides = [1, 1]} : vector<32x3xf32> to vector<32x1xf32>
    %22 = vector.extract_strided_slice %3 {offsets = [2, 0], sizes = [1, 16], strides = [1, 1]} : vector<3x16xf32> to vector<1x16xf32>
    %23 = vector.broadcast %21 : vector<32x1xf32> to vector<32x16xf32>
    %24 = vector.broadcast %22 : vector<1x16xf32> to vector<32x16xf32>
    %25 = arith.subf %23, %24 : vector<32x16xf32>
    %26 = arith.mulf %25, %25 : vector<32x16xf32>
    %27 = arith.addf %20, %26 : vector<32x16xf32>
    %cst = arith.constant dense<0x7F800000> : vector<32xf32>
    %28 = vector.multi_reduction <minimumf>, %27, %cst [1] : vector<32x16xf32> to vector<32xf32>
    %29 = vector.shape_cast %28 : vector<32xf32> to vector<32x1xf32>
    %30 = vector.broadcast %29 : vector<32x1xf32> to vector<32x16xf32>
    %31 = arith.cmpf ole, %27, %30 : vector<32x16xf32>
    %cst_11 = arith.constant 3.000000e+38 : f32
    %32 = vector.broadcast %cst_11 : f32 to vector<32x16xf32>
    %33 = arith.select %31, %32, %27 : vector<32x16xi1>, vector<32x16xf32>
    %cst_12 = arith.constant dense<0x7F800000> : vector<32xf32>
    %34 = vector.multi_reduction <minimumf>, %33, %cst_12 [1] : vector<32x16xf32> to vector<32xf32>
    %35 = vector.shape_cast %34 : vector<32xf32> to vector<32x1xf32>
    %36 = vector.broadcast %35 : vector<32x1xf32> to vector<32x16xf32>
    %37 = arith.cmpf ole, %33, %36 : vector<32x16xf32>
    %cst_13 = arith.constant 3.000000e+38 : f32
    %38 = vector.broadcast %cst_13 : f32 to vector<32x16xf32>
    %39 = arith.select %37, %38, %33 : vector<32x16xi1>, vector<32x16xf32>
    %cst_14 = arith.constant dense<0x7F800000> : vector<32xf32>
    %40 = vector.multi_reduction <minimumf>, %39, %cst_14 [1] : vector<32x16xf32> to vector<32xf32>
    %41 = vector.shape_cast %40 : vector<32xf32> to vector<32x1xf32>
    %cst_15 = arith.constant 9.99999993E-9 : f32
    %42 = vector.broadcast %cst_15 : f32 to vector<32x1xf32>
    %43 = arith.addf %29, %42 : vector<32x1xf32>
    %44 = tpu.reciprocal %43 {approx = true} : vector<32x1xf32> -> vector<32x1xf32>
    %cst_16 = arith.constant 9.99999993E-9 : f32
    %45 = vector.broadcast %cst_16 : f32 to vector<32x1xf32>
    %46 = arith.addf %35, %45 : vector<32x1xf32>
    %47 = tpu.reciprocal %46 {approx = true} : vector<32x1xf32> -> vector<32x1xf32>
    %cst_17 = arith.constant 9.99999993E-9 : f32
    %48 = vector.broadcast %cst_17 : f32 to vector<32x1xf32>
    %49 = arith.addf %41, %48 : vector<32x1xf32>
    %50 = tpu.reciprocal %49 {approx = true} : vector<32x1xf32> -> vector<32x1xf32>
    %51 = vector.broadcast %29 : vector<32x1xf32> to vector<32x16xf32>
    %52 = arith.cmpf oeq, %27, %51 : vector<32x16xf32>
    %cst_18 = arith.constant 0.000000e+00 : f32
    %53 = vector.shape_cast %44 : vector<32x1xf32> to vector<32x1xf32>
    %54 = vector.broadcast %53 : vector<32x1xf32> to vector<32x16xf32>
    %55 = vector.broadcast %cst_18 : f32 to vector<32x16xf32>
    %56 = arith.select %52, %54, %55 : vector<32x16xi1>, vector<32x16xf32>
    %57 = vector.broadcast %35 : vector<32x1xf32> to vector<32x16xf32>
    %58 = arith.cmpf oeq, %27, %57 : vector<32x16xf32>
    %cst_19 = arith.constant 0.000000e+00 : f32
    %59 = vector.shape_cast %47 : vector<32x1xf32> to vector<32x1xf32>
    %60 = vector.broadcast %59 : vector<32x1xf32> to vector<32x16xf32>
    %61 = vector.broadcast %cst_19 : f32 to vector<32x16xf32>
    %62 = arith.select %58, %60, %61 : vector<32x16xi1>, vector<32x16xf32>
    %63 = arith.addf %56, %62 : vector<32x16xf32>
    %64 = vector.broadcast %41 : vector<32x1xf32> to vector<32x16xf32>
    %65 = arith.cmpf oeq, %27, %64 : vector<32x16xf32>
    %cst_20 = arith.constant 0.000000e+00 : f32
    %66 = vector.shape_cast %50 : vector<32x1xf32> to vector<32x1xf32>
    %67 = vector.broadcast %66 : vector<32x1xf32> to vector<32x16xf32>
    %68 = vector.broadcast %cst_20 : f32 to vector<32x16xf32>
    %69 = arith.select %65, %67, %68 : vector<32x16xi1>, vector<32x16xf32>
    %70 = arith.addf %63, %69 : vector<32x16xf32>
    %cst_21 = arith.constant dense<0.000000e+00> : vector<32xf32>
    %71 = vector.multi_reduction <add>, %70, %cst_21 [1] : vector<32x16xf32> to vector<32xf32>
    %72 = vector.shape_cast %71 : vector<32xf32> to vector<32x1xf32>
    %73 = tpu.reciprocal %72 {approx = true} : vector<32x1xf32> -> vector<32x1xf32>
    %74 = vector.broadcast %73 : vector<32x1xf32> to vector<32x16xf32>
    %75 = arith.mulf %70, %74 : vector<32x16xf32>
    %76 = arith.truncf %75 : vector<32x16xf32> to vector<32x16xbf16>
    %cst_22 = arith.constant dense<0.000000e+00> : vector<32x32xf32>
    %77 = tpu.matmul %76, %5, %cst_22 {dimension_numbers = #tpu.dot_dimension_numbers<[1], [0], [0], [1], [0, 0, 1, 1], [], []>} : vector<32x16xbf16>, vector<16x32xbf16>, vector<32x32xf32> -> vector<32x32xf32>
    %78 = arith.addf %77, %7 : vector<32x32xf32>
    %c0_23 = arith.constant 0 : index
    %c0_24 = arith.constant 0 : index
    %c0_25 = arith.constant 0 : index
    %79 = vector.load %arg6[%c0_23, %c0_24, %c0_25] : memref<1x32x32xf32, #tpu.memory_space<vmem>>, vector<1x32x32xf32>
    %80 = vector.shape_cast %79 : vector<1x32x32xf32> to vector<32x32xf32>
    %81 = vector.shape_cast %78 : vector<32x32xf32> to vector<1x32x32xf32>
    tpu.vector_store %arg6[%c0_23, %c0_24, %c0_25], %81 {strides = array<i32>} : memref<1x32x32xf32, #tpu.memory_space<vmem>>, vector<1x32x32xf32>,
    return
  }
  func.func @transform_0(%arg0: i32, %arg1: i32) -> (i32, i32, i32) {
    %c0_i32 = arith.constant 0 : i32
    %c0_i32_0 = arith.constant 0 : i32
    return %arg0, %arg1, %c0_i32 : i32, i32, i32
  }
  func.func @transform_1(%arg0: i32, %arg1: i32) -> (i32, i32, i32) {
    %c0_i32 = arith.constant 0 : i32
    %c0_i32_0 = arith.constant 0 : i32
    %c0_i32_1 = arith.constant 0 : i32
    return %arg0, %c0_i32, %c0_i32_0 : i32, i32, i32
  }
  func.func @transform_2(%arg0: i32, %arg1: i32) -> (i32, i32, i32) {
    %c0_i32 = arith.constant 0 : i32
    %c0_i32_0 = arith.constant 0 : i32
    %c0_i32_1 = arith.constant 0 : i32
    return %arg0, %c0_i32, %c0_i32_0 : i32, i32, i32
  }
  func.func @transform_3(%arg0: i32, %arg1: i32) -> (i32, i32, i32) {
    %c0_i32 = arith.constant 0 : i32
    %c0_i32_0 = arith.constant 0 : i32
    return %arg0, %arg1, %c0_i32 : i32, i32, i32
  }
  func.func @transform_4(%arg0: i32, %arg1: i32) -> (i32, i32, i32) {
    %c0_i32 = arith.constant 0 : i32
    %c0_i32_0 = arith.constant 0 : i32
    return %arg0, %arg1, %c0_i32 : i32, i32, i32
  }
}

</mosaic_0001>

<bundles_post_ra>
// kernel: transition_up.7
= control target key start
LH: loop header
LB: loop body
LE: loop exit
PB: predicated region body
PF: predicated region fallthrough
CT: control target
= control target key end

     0   :  { %vm83_vm0 = vcmask 130048   ;;  %vm41_vm1 = vcmask 254976   ;;  %v226_v5 = vmov 0.0   ;;  %vm125_vm2 = vcmask 261120   ;;  %s292_s1 = inlined_call_operand.vmem [shape: bf16[16,32], index: 1, kind: input, shape index: {}]   ;;  %s293_s0 = inlined_call_operand.vmem [shape: bf16[64,16], index: 0, kind: input, shape index: {}]   ;;  %s294_s2 = inlined_call_operand.vmem [shape: f32[1,32], index: 2, kind: input, shape index: {}]   ;;  %s295_s3 = inlined_call_operand.vmem [shape: f32[1,2,32], index: 3, kind: output, shape index: {}]  }
   0x1   :  { %v220_v0 = vld [vmem:[%s292_s1] sm:$0xff]  ;;  %v217_v2 = vld [vmem:[%s293_s0 + $0x8] sm:$0xff]  ;;  %v218_v3 = vld [vmem:[%s293_s0 + $0x10] sm:$0xff]  ;;  %42 = vst.msk [vmem:[%s295_s3] sm:$0x3] %vm41_vm1, %v226_v5  ;;  %vm177_vm3 = vcmask 1040384  }
   0x2   :  { %v216_v1 = vld [vmem:[%s293_s0] sm:$0xff]  ;;  %103 = vmatpush.bf16.msra.mxu0 %v220_v0  ;;  %221 = vmatpush.bf16.msra.mxu1 %v220_v0  ;;  %v219_v4 = vld [vmem:[%s293_s0 + $0x18] sm:$0xff] }
   0x3   :  { %222 = vmatpush.bf16.msra.mxu2 %v220_v0  ;;  %223 = vmatpush.bf16.msra.mxu3 %v220_v0  ;;  %v225_v8 = vld [vmem:[%s294_s2] ss:$0 sm:$0xff] }
   0x5   :  { %212 = vmatmul.msk.bf16.vlgmr.msra.gmra.mxu0 %vm83_vm0, %v216_v1  ;;  %213 = vmatmul.msk.bf16.vlgmr.msra.gmra.mxu1 %vm83_vm0, %v217_v2 }
   0x6   :  { %214 = vmatmul.msk.bf16.vlgmr.msra.gmra.mxu2 %vm83_vm0, %v218_v3  ;;  %215 = vmatmul.msk.bf16.vlgmr.msra.gmra.mxu3 %vm83_vm0, %v219_v4 }
  0x82   :  { %v105_v6 = vpop.f32.mrf.mxu0  ;;  %v110_v7 = vpop.f32.mrf.mxu1 }
  0x83   :  { %v106_v9 = vadd.f32 %v225_v8, %v105_v6  ;;  %v111_v10 = vadd.f32 %v225_v8, %v110_v7 }
  0x85   :  { %v147_v15 = vmul.f32 %v106_v9, %v106_v9  ;;  %v126_v18 = vsel %vm125_vm2, %v106_v9, 0.0  ;;  %v149_v19 = vmul.f32 %v111_v10, %v111_v10  ;;  %v129_v25 = vsel %vm125_vm2, %v111_v10, 0.0  ;;  %v176_v9 = vld [vmem:[%s295_s3] sm:$0x3] }
  0x87   :  { %v155_v24 = vsel %vm125_vm2, %v147_v15, 0.0  ;;  %v158_v30 = vsel %vm125_vm2, %v149_v19, 0.0 }
  0x89   :  { %v115_v11 = vpop.f32.mrf.mxu2  ;;  %v120_v12 = vpop.f32.mrf.mxu3 }
  0x8a   :  { %v107_v13 = vpop.f32.mrf.mxu0  ;;  %v112_v14 = vpop.f32.mrf.mxu1  ;;  %v116_v20 = vadd.f32 %v225_v8, %v115_v11  ;;  %v121_v32 = vadd.f32 %v225_v8, %v120_v12 }
  0x8b   :  { %v108_v16 = vadd.f32 %v225_v8, %v107_v13  ;;  %v113_v17 = vadd.f32 %v225_v8, %v112_v14 }
  0x8c   :  { %v151_v31 = vmul.f32 %v116_v20, %v116_v20  ;;  %v133_v39 = vsel %vm125_vm2, %v116_v20, 0.0  ;;  %v153_v46 = vmul.f32 %v121_v32, %v121_v32  ;;  %v137_v50 = vsel %vm125_vm2, %v121_v32, 0.0 }
  0x8d   :  { %v127_v21 = vsel %vm125_vm2, %v108_v16, 0.0  ;;  %v148_v22 = vmul.f32 %v108_v16, %v108_v16  ;;  %v150_v27 = vmul.f32 %v113_v17, %v113_v17  ;;  %v131_v33 = vsel %vm125_vm2, %v113_v17, 0.0 }
  0x8e   :  { %v128_v23 = vadd.f32 %v127_v21, %v126_v18  ;;  %v162_v45 = vsel %vm125_vm2, %v151_v31, 0.0  ;;  %v166_v55 = vsel %vm125_vm2, %v153_v46, 0.0 }
  0x8f   :  { %v156_v26 = vsel %vm125_vm2, %v148_v22, 0.0  ;;  %v160_v40 = vsel %vm125_vm2, %v150_v27, 0.0 }
  0x90   :  { %v157_v28 = vadd.f32 %v156_v26, %v155_v24  ;;  %v130_v29 = vadd.f32 %v129_v25, %v128_v23 }
  0x91   :  { %v117_v34 = vpop.f32.mrf.mxu2  ;;  %v122_v35 = vpop.f32.mrf.mxu3 }
  0x92   :  { %v132_v36 = vadd.f32 %v131_v33, %v130_v29  ;;  %v159_v37 = vadd.f32 %v158_v30, %v157_v28  ;;  %v118_v38 = vadd.f32 %v225_v8, %v117_v34  ;;  %v123_v41 = vadd.f32 %v225_v8, %v122_v35 }
  0x94   :  { %v161_v42 = vadd.f32 %v160_v40, %v159_v37  ;;  %v134_v43 = vadd.f32 %v133_v39, %v132_v36  ;;  %v152_v44 = vmul.f32 %v118_v38, %v118_v38  ;;  %v135_v47 = vsel %vm125_vm2, %v118_v38, 0.0 }
  0x95   :  { %v154_v52 = vmul.f32 %v123_v41, %v123_v41  ;;  %v139_v56 = vsel %vm125_vm2, %v123_v41, 0.0 }
  0x96   :  { %v136_v48 = vadd.f32 %v135_v47, %v134_v43  ;;  %v163_v49 = vadd.f32 %v162_v45, %v161_v42  ;;  %v164_v51 = vsel %vm125_vm2, %v152_v44, 0.0 }
  0x97   :  { %v168_v59 = vsel %vm125_vm2, %v154_v52, 0.0 }
  0x98   :  { %v165_v53 = vadd.f32 %v164_v51, %v163_v49  ;;  %v138_v54 = vadd.f32 %v137_v50, %v136_v48 }
  0x9a   :  { %v140_v57 = vadd.f32 %v139_v56, %v138_v54  ;;  %v167_v58 = vadd.f32 %v166_v55, %v165_v53 }
  0x9c   :  { %v141_v60 = vrot.slane %v140_v57, 4  ;;  %v169_v61 = vadd.f32 %v168_v59, %v167_v58 }
  0x9e   :  { %v142_v62 = vadd.f32 %v141_v60, %v140_v57  ;;  %v170_v63 = vrot.slane %v169_v61, 4 }
  0xa0   :  { %v143_v0 = vrot.slane %v142_v62, 2  ;;  %v171_v1 = vadd.f32 %v170_v63, %v169_v61 }
  0xa2   :  { %v144_v2 = vadd.f32 %v143_v0, %v142_v62  ;;  %v172_v3 = vrot.slane %v171_v1, 2 }
  0xa4   :  { %v145_v4 = vrot.slane %v144_v2, 1  ;;  %v173_v5 = vadd.f32 %v172_v3, %v171_v1 }
  0xa6   :  { %v174_v6 = vrot.slane %v173_v5, 1  ;;  %v146_v7 = vadd.f32 %v145_v4, %v144_v2 }
  0xa8   :  { %v175_v8 = vadd.f32 %v174_v6, %v173_v5 }
  0xaa   :  { %v178_v10 = vsel %vm177_vm3, %v146_v7, %v175_v8 }
  0xab   :  { %v179_v11 = vadd.f32 %v178_v10, %v176_v9 }
  0xad   :  { %181 = vst.msk [vmem:[%s295_s3] sm:$0x3] %vm41_vm1, %v179_v11 }

// kernel: transition_up.5
= control target key start
LH: loop header
LB: loop body
LE: loop exit
PB: predicated region body
PF: predicated region fallthrough
CT: control target
= control target key end

     0   :  { %vm77_vm0 = vcmask 261120   ;;  %vm41_vm1 = vcmask 254976   ;;  %v175_v4 = vmov 0.0   ;;  %vm134_vm2 = vcmask 1040384   ;;  %s232_s1 = inlined_call_operand.vmem [shape: bf16[32,32], index: 1, kind: input, shape index: {}]   ;;  %s233_s2 = inlined_call_operand.vmem [shape: f32[1,32], index: 2, kind: input, shape index: {}]   ;;  %s234_s0 = inlined_call_operand.vmem [shape: bf16[32,32], index: 0, kind: input, shape index: {}]   ;;  %s235_s3 = inlined_call_operand.vmem [shape: f32[1,2,32], index: 3, kind: output, shape index: {}]  }
   0x1   :  { %v170_v0 = vld [vmem:[%s232_s1 + $0x8] sm:$0xff]  ;;  %v169_v1 = vld [vmem:[%s232_s1] sm:$0xff]  ;;  %42 = vst.msk [vmem:[%s235_s3] sm:$0x3] %vm41_vm1, %v175_v4 }
   0x2   :  { %90 = vmatpush.bf16.msra.mxu0 %v170_v0  ;;  %171 = vmatpush.bf16.msra.mxu1 %v170_v0  ;;  %v167_v2 = vld [vmem:[%s234_s0] sm:$0xff]  ;;  %v168_v3 = vld [vmem:[%s234_s0 + $0x8] sm:$0xff] }
   0x3   :  { %v174_v7 = vld [vmem:[%s233_s2] ss:$0 sm:$0xff] }
   0x6   :  { %91 = vmatpush.bf16.msra.mxu0 %v169_v1  ;;  %172 = vmatpush.bf16.msra.mxu1 %v169_v1 }
   0x8   :  { %v133_v44 = vld [vmem:[%s235_s3] sm:$0x3] }
   0x9   :  { %165 = vmatmul.msk.bf16.vlgmr.msra.gmra.mxu0 %vm77_vm0, %v167_v2  ;;  %166 = vmatmul.msk.bf16.vlgmr.msra.gmra.mxu1 %vm77_vm0, %v168_v3 }
  0x86   :  { %v93_v5 = vpop.f32.mrf.mxu0  ;;  %v98_v6 = vpop.f32.mrf.mxu1 }
  0x87   :  { %v94_v8 = vadd.f32 %v174_v7, %v93_v5  ;;  %v99_v9 = vadd.f32 %v174_v7, %v98_v6 }
  0x89   :  { %v116_v12 = vmul.f32 %v94_v8, %v94_v8  ;;  %v103_v15 = vsel %vm77_vm0, %v94_v8, 0.0  ;;  %v118_v16 = vmul.f32 %v99_v9, %v99_v9  ;;  %v106_v21 = vsel %vm77_vm0, %v99_v9, 0.0 }
  0x8b   :  { %v120_v20 = vsel %vm77_vm0, %v116_v12, 0.0  ;;  %v123_v26 = vsel %vm77_vm0, %v118_v16, 0.0 }
  0x8e   :  { %v95_v10 = vpop.f32.mrf.mxu0  ;;  %v100_v11 = vpop.f32.mrf.mxu1 }
  0x8f   :  { %v96_v13 = vadd.f32 %v174_v7, %v95_v10  ;;  %v101_v14 = vadd.f32 %v174_v7, %v100_v11 }
  0x91   :  { %v104_v17 = vsel %vm77_vm0, %v96_v13, 0.0  ;;  %v117_v18 = vmul.f32 %v96_v13, %v96_v13  ;;  %v119_v23 = vmul.f32 %v101_v14, %v101_v14  ;;  %v108_v27 = vsel %vm77_vm0, %v101_v14, 0.0 }
  0x92   :  { %v105_v19 = vadd.f32 %v104_v17, %v103_v15 }
  0x93   :  { %v121_v22 = vsel %vm77_vm0, %v117_v18, 0.0  ;;  %v125_v30 = vsel %vm77_vm0, %v119_v23, 0.0 }
  0x94   :  { %v122_v24 = vadd.f32 %v121_v22, %v120_v20  ;;  %v107_v25 = vadd.f32 %v106_v21, %v105_v19 }
  0x96   :  { %v109_v28 = vadd.f32 %v108_v27, %v107_v25  ;;  %v124_v29 = vadd.f32 %v123_v26, %v122_v24 }
  0x98   :  { %v110_v31 = vrot.slane %v109_v28, 4  ;;  %v126_v32 = vadd.f32 %v125_v30, %v124_v29 }
  0x9a   :  { %v111_v33 = vadd.f32 %v110_v31, %v109_v28  ;;  %v127_v34 = vrot.slane %v126_v32, 4 }
  0x9c   :  { %v112_v35 = vrot.slane %v111_v33, 2  ;;  %v128_v36 = vadd.f32 %v127_v34, %v126_v32 }
  0x9e   :  { %v113_v37 = vadd.f32 %v112_v35, %v111_v33  ;;  %v129_v38 = vrot.slane %v128_v36, 2 }
  0xa0   :  { %v114_v39 = vrot.slane %v113_v37, 1  ;;  %v130_v40 = vadd.f32 %v129_v38, %v128_v36 }
  0xa2   :  { %v131_v41 = vrot.slane %v130_v40, 1  ;;  %v115_v42 = vadd.f32 %v114_v39, %v113_v37 }
  0xa4   :  { %v132_v43 = vadd.f32 %v131_v41, %v130_v40 }
  0xa6   :  { %v135_v45 = vsel %vm134_vm2, %v115_v42, %v132_v43 }
  0xa7   :  { %v136_v46 = vadd.f32 %v135_v45, %v133_v44 }
  0xa9   :  { %138 = vst.msk [vmem:[%s235_s3] sm:$0x3] %vm41_vm1, %v136_v46 }

// kernel: transition_up.6
= control target key start
LH: loop header
LB: loop body
LE: loop exit
PB: predicated region body
PF: predicated region fallthrough
CT: control target
= control target key end

     0   :  { %vm48_vm0 = vcmask 261120   ;;  %s189_s1 = inlined_call_operand.vmem [shape: bf16[32,32], index: 1, kind: input, shape index: {}]   ;;  %s190_s2 = inlined_call_operand.vmem [shape: f32[1,32], index: 2, kind: input, shape index: {}]   ;;  %s191_s3 = inlined_call_operand.vmem [shape: f32[1,32], index: 3, kind: input, shape index: {}]   ;;  %s192_s0 = inlined_call_operand.vmem [shape: bf16[32,32], index: 0, kind: input, shape index: {}]   ;;  %s193_s4 = inlined_call_operand.vmem [shape: f32[32,32], index: 4, kind: output, shape index: {}]  }
   0x1   :  { %v123_v0 = vld [vmem:[%s189_s1 + $0x8] sm:$0xff]  ;;  %v122_v1 = vld [vmem:[%s189_s1] sm:$0xff] }
   0x2   :  { %61 = vmatpush.bf16.msra.mxu0 %v123_v0  ;;  %124 = vmatpush.bf16.msra.mxu1 %v123_v0  ;;  %v120_v2 = vld [vmem:[%s192_s0] sm:$0xff]  ;;  %v121_v3 = vld [vmem:[%s192_s0 + $0x8] sm:$0xff] }
   0x3   :  { %v126_v4 = vld [vmem:[%s190_s2] ss:$0 sm:$0xff] }
   0x4   :  { %v127_v5 = vld [vmem:[%s191_s3] ss:$0 sm:$0xff] }
   0x6   :  { %62 = vmatpush.bf16.msra.mxu0 %v122_v1  ;;  %125 = vmatpush.bf16.msra.mxu1 %v122_v1 }
   0x9   :  { %118 = vmatmul.msk.bf16.vlgmr.msra.gmra.mxu0 %vm48_vm0, %v120_v2  ;;  %119 = vmatmul.msk.bf16.vlgmr.msra.gmra.mxu1 %vm48_vm0, %v121_v3 }
  0x86   :  { %v64_v6 = vpop.f32.mrf.mxu0  ;;  %v69_v7 = vpop.f32.mrf.mxu1 }
  0x87   :  { %v78_v8 = vmul.f32 %v126_v4, %v64_v6  ;;  %v80_v9 = vmul.f32 %v126_v4, %v69_v7 }
  0x89   :  { %v86_v10 = vadd.f32 %v127_v5, %v78_v8  ;;  %v88_v11 = vadd.f32 %v127_v5, %v80_v9 }
  0x8b   :  { %v90_v12 = vmax.f32 %v86_v10, 0.0  ;;  %v92_v13 = vmax.f32 %v88_v11, 0.0 }
  0x8d   :  { %94 = vst.msk [vmem:[%s193_s4] sm:$0xff] %vm48_vm0, %v90_v12 }
  0x8e   :  { %96 = vst.msk [vmem:[%s193_s4 + $0x10] sm:$0xff] %vm48_vm0, %v92_v13  ;;  %v66_v14 = vpop.f32.mrf.mxu0  ;;  %v71_v15 = vpop.f32.mrf.mxu1 }
  0x8f   :  { %v79_v16 = vmul.f32 %v126_v4, %v66_v14  ;;  %v81_v17 = vmul.f32 %v126_v4, %v71_v15 }
  0x91   :  { %v87_v18 = vadd.f32 %v127_v5, %v79_v16  ;;  %v89_v19 = vadd.f32 %v127_v5, %v81_v17 }
  0x93   :  { %v91_v20 = vmax.f32 %v87_v18, 0.0  ;;  %v93_v21 = vmax.f32 %v89_v19, 0.0 }
  0x95   :  { %95 = vst.msk [vmem:[%s193_s4 + $0x8] sm:$0xff] %vm48_vm0, %v91_v20 }
  0x96   :  { %97 = vst.msk [vmem:[%s193_s4 + $0x18] sm:$0xff] %vm48_vm0, %v93_v21 }

// kernel: transition_up.8
= control target key start
LH: loop header
LB: loop body
LE: loop exit
PB: predicated region body
PF: predicated region fallthrough
CT: control target
= control target key end

     0   :  { %vm55_vm0 = vcmask 130048   ;;  %s279_s0 = inlined_call_operand.vmem [shape: bf16[64,16], index: 0, kind: input, shape index: {}]   ;;  %s280_s1 = inlined_call_operand.vmem [shape: bf16[16,32], index: 1, kind: input, shape index: {}]   ;;  %s281_s2 = inlined_call_operand.vmem [shape: f32[1,32], index: 2, kind: input, shape index: {}]   ;;  %s282_s3 = inlined_call_operand.vmem [shape: f32[1,32], index: 3, kind: input, shape index: {}]   ;;  %s283_s4 = inlined_call_operand.hbm [shape: f32[64,32], index: 4, kind: output, shape index: {}]  }
   0x1   :  { %v184_v0 = vld [vmem:[%s280_s1] sm:$0xff]  ;;  %v181_v2 = vld [vmem:[%s279_s0 + $0x8] sm:$0xff]  ;;  %v182_v3 = vld [vmem:[%s279_s0 + $0x10] sm:$0xff] }
   0x2   :  { %v180_v1 = vld [vmem:[%s279_s0] sm:$0xff]  ;;  %75 = vmatpush.bf16.msra.mxu0 %v184_v0  ;;  %185 = vmatpush.bf16.msra.mxu1 %v184_v0  ;;  %v183_v4 = vld [vmem:[%s279_s0 + $0x18] sm:$0xff] }
   0x3   :  { %9 = vsyncpa [#allocation3], 0  ;;  %186 = vmatpush.bf16.msra.mxu2 %v184_v0  ;;  %187 = vmatpush.bf16.msra.mxu3 %v184_v0  ;;  %v191_v5 = vld [vmem:[%s281_s2] ss:$0 sm:$0xff]  ;;  %vm129_vm1 = vcmask 261120   ;;  %s219_s0 = smov [#allocation2]  }
   0x4   :  { %v192_v6 = vld [vmem:[%s282_s3] ss:$0 sm:$0xff]  ;;  %s142_s2 = sshll.u32 %s219_s0, 4  ;;  %s144_s29 = sshll.u32 %s283_s4, 4  ;;  %s143_s2 = int_to_ptr.vmem [resolvable:$true] %s142_s2  ;;  %s145_s29 = int_to_ptr.hbm [resolvable:$true] %s144_s29 }
   0x5   :  { %176 = vmatmul.msk.bf16.vlgmr.msra.gmra.mxu0 %vm55_vm0, %v180_v1  ;;  %177 = vmatmul.msk.bf16.vlgmr.msra.gmra.mxu1 %vm55_vm0, %v181_v2  ;;  %s220_s30 = smov 128   ;;  %s221_s5 = smov 8  }
   0x6   :  { %178 = vmatmul.msk.bf16.vlgmr.msra.gmra.mxu2 %vm55_vm0, %v182_v3  ;;  %179 = vmatmul.msk.bf16.vlgmr.msra.gmra.mxu3 %vm55_vm0, %v183_v4 }
  0x82   :  { %v77_v7 = vpop.f32.mrf.mxu0  ;;  %v82_v8 = vpop.f32.mrf.mxu1 }
  0x83   :  { %v101_v9 = vmul.f32 %v191_v5, %v77_v7  ;;  %v103_v10 = vmul.f32 %v191_v5, %v82_v8 }
  0x85   :  { %v113_v11 = vadd.f32 %v192_v6, %v101_v9  ;;  %v115_v12 = vadd.f32 %v192_v6, %v103_v10 }
  0x87   :  { %v121_v13 = vmax.f32 %v113_v11, 0.0  ;;  %v123_v14 = vmax.f32 %v115_v12, 0.0 }
  0x89   :  { %130 = vst.msk [vmem:[#allocation2] sm:$0xff] %vm129_vm1, %v121_v13  ;;  %v87_v15 = vpop.f32.mrf.mxu2  ;;  %v92_v16 = vpop.f32.mrf.mxu3 }
  0x8a   :  { %132 = vst.msk [vmem:[#allocation2 + $0x10] sm:$0xff] %vm129_vm1, %v123_v14  ;;  %v105_v17 = vmul.f32 %v191_v5, %v87_v15  ;;  %v107_v18 = vmul.f32 %v191_v5, %v92_v16  ;;  %v79_v19 = vpop.f32.mrf.mxu0  ;;  %v84_v20 = vpop.f32.mrf.mxu1 }
  0x8b   :  { %v102_v21 = vmul.f32 %v191_v5, %v79_v19  ;;  %v104_v22 = vmul.f32 %v191_v5, %v84_v20 }
  0x8c   :  { %v117_v23 = vadd.f32 %v192_v6, %v105_v17  ;;  %v119_v24 = vadd.f32 %v192_v6, %v107_v18 }
  0x8d   :  { %v114_v25 = vadd.f32 %v192_v6, %v102_v21  ;;  %v116_v26 = vadd.f32 %v192_v6, %v104_v22 }
  0x8e   :  { %v125_v27 = vmax.f32 %v117_v23, 0.0  ;;  %v127_v28 = vmax.f32 %v119_v24, 0.0 }
  0x8f   :  { %v122_v29 = vmax.f32 %v114_v25, 0.0  ;;  %v124_v30 = vmax.f32 %v116_v26, 0.0 }
  0x90   :  { %134 = vst.msk [vmem:[#allocation2 + $0x20] sm:$0xff] %vm129_vm1, %v125_v27 }
  0x91   :  { %136 = vst.msk [vmem:[#allocation2 + $0x30] sm:$0xff] %vm129_vm1, %v127_v28  ;;  %v89_v31 = vpop.f32.mrf.mxu2  ;;  %v94_v32 = vpop.f32.mrf.mxu3 }
  0x92   :  { %131 = vst.msk [vmem:[#allocation2 + $0x8] sm:$0xff] %vm129_vm1, %v122_v29  ;;  %v106_v33 = vmul.f32 %v191_v5, %v89_v31  ;;  %v108_v34 = vmul.f32 %v191_v5, %v94_v32 }
  0x93   :  { %133 = vst.msk [vmem:[#allocation2 + $0x18] sm:$0xff] %vm129_vm1, %v124_v30 }
  0x94   :  { %v118_v35 = vadd.f32 %v192_v6, %v106_v33  ;;  %v120_v36 = vadd.f32 %v192_v6, %v108_v34 }
  0x96   :  { %v126_v37 = vmax.f32 %v118_v35, 0.0  ;;  %v128_v38 = vmax.f32 %v120_v36, 0.0 }
  0x98   :  { %135 = vst.msk [vmem:[#allocation2 + $0x28] sm:$0xff] %vm129_vm1, %v126_v37 }
  0x99   :  { %137 = vst.msk [vmem:[#allocation2 + $0x38] sm:$0xff] %vm129_vm1, %v128_v38 }
  0x9a   :  { %150 = dma.vmem_to_hbm [thread:$0]  %s143_s2, 1024, %s145_s29, [#allocation3], %s220_s30, %s220_s30, %s221_s5  }
  0x9b   :  { %217 = dma.done.wait [#allocation3], 1024  }
  0x9c   :  { %218 = vsyncadd [#allocation3], 4294966272 }
  0x9d   :  { %155 = vsyncpa [#allocation3], 1 }

// kernel: transition_up.9
= control target key start
LH: loop header
LB: loop body
LE: loop exit
PB: predicated region body
PF: predicated region fallthrough
CT: control target
= control target key end

     0   :  { %9 = vsyncpa [#allocation3], 0  ;;  %s1235_s0 = inlined_call_operand.vmem [shape: f32[2,32,3], index: 0, kind: input, shape index: {}]   ;;  %s1236_s1 = inlined_call_operand.vmem [shape: f32[2,3,16], index: 1, kind: input, shape index: {}]   ;;  %s1237_s2 = inlined_call_operand.vmem [shape: bf16[2,16,32], index: 2, kind: input, shape index: {}]   ;;  %s1238_s3 = inlined_call_operand.hbm [shape: f32[2,32,32], index: 3, kind: input, shape index: {}, may-alias: {3,4}]   ;;  %s1239_s4 = inlined_call_operand.hbm [shape: f32[2,32,32], index: 4, kind: output, shape index: {}, may-alias: {3,4}]  }
   0x1   :  { %11 = vsyncpa [#allocation3 + $0x1], 0 }
   0x2   :  { %12 = vsyncpa [#allocation4], 0 }
   0x3   :  { %14 = vsyncpa [#allocation4 + $0x1], 0  ;;  %s1011_s15 = smov 0   ;;  %s1013_s16 = smov 0  }
   0x4   :  { %s1015_s17 = smov 0   ;;  %s1017_s18 = smov 0  }
   0x5   :  { %s1019_s19 = smov 0   ;;  %s1021_s20 = smov 0  }
   0x6 LB: > { %s724_s21 = sadd.s32 4294967295, %s977_s20   ;;  %s725_s22 = sadd.s32 4294967294, %s977_s20   ;;  %s977_s20 = sphi %s1021_s20, %s20_s20   ;;  %s973_s19 = sphi %s1019_s19, %s1248_s19   ;;  %s969_s18 = sphi %s1017_s18, %s1247_s18   ;;  %s965_s17 = sphi %s1015_s17, %s1246_s17   ;;  %s961_s16 = sphi %s1013_s16, %s1245_s16   ;;  %s957_s15 = sphi %s1011_s15, %s1244_s15  }
   0x7   : > { %s32_s23 = sadd.s32 1, %s973_s19  ;;  %s121_s24 = sadd.s32 1, %s965_s17 }
   0x8   : > { %p34_p0 = scmp.ge.s32.totalorder %s32_s23, 2  ;;  %p128_p1 = scmp.ne.s32.totalorder %s965_s17, %s961_s16 }
   0x9   : > { %p129_p2 = scmp.eq.s32.totalorder %s977_s20, 0  ;;  %p134_p3 = scmp.ne.s32.totalorder %s961_s16, %s957_s15 }
   0xa   : > { %s1250_s23 = smov (%p34_p0, %s32_s23), 0  ;;  %p135_p5 = scmp.eq.s32.totalorder %s724_s21, 0 }
   0xb   : > { %p1052_p4 = por %p129_p2, %p128_p1  ;;  %s116_s26 = ssub.s32 %s973_s19, %s1250_s23 }
   0xc   : > { %p160_p6 = scmp.eq.s32.totalorder %s724_s21, 1  ;;  %p119_p7 = scmp.eq.s32.totalorder %s116_s26, 0 }
   0xd   : > { %p1058_p8 = por %p135_p5, %p134_p3  ;;  %p166_p10 = scmp.eq.s32.totalorder %s725_s22, 1 }
   0xe   : > { %p1062_p9 = por %p160_p6, %p128_p1  ;;  %p727_p12 = scmp.ge.s32.totalorder %s977_s20, 2 }
   0xf   : > { %s1067_s29 = scalar_select %p119_p7, %s965_s17, %s121_s24  }
  0x10   : > { %p1069_p11 = por %p166_p10, %p134_p3  ;;  %p768_p13 = scmp.lt.s32.totalorder %s977_s20, 2 }
  0x11   : > { %s214_s5 = sand.u32 1, %s965_s17   ;;  %s750_s7 = sshll.u32 %s973_s19, 5 }
  0x12   : > { %s728_s6 = sshll.u32 %s214_s5, 5  ;;  %s225_s10 = scalar_lea.hbm %s1238_s3, %s750_s7 }
  0x13   : > { %s218_s11 = scalar_lea.vmem [#allocation2], %s728_s6  ;;  %s226_s13 = sshll.u32 %s225_s10, 4  ;;  %s227_s13 = int_to_ptr.hbm [resolvable:$true] %s226_s13 }
  0x14   : > { %s228_s12 = sshll.u32 %s218_s11, 4  ;;  %p761_p0 = pnand %p768_p13, %p1052_p4  ;;  %s229_s12 = int_to_ptr.vmem [resolvable:$true] %s228_s12 }
  0x15   : > { %p731_p1 = scmp.ge.s32.totalorder %s977_s20, 1  ;;  %s215_s14 = scalar_lea.sflag [#allocation3], %s214_s5 }
  0x16   : > { %s979_s21 = smov 128   ;;  %s980_s22 = smov 8  }
  0x17   : > { %763 = dma.hbm_to_vmem [thread:$0]  (!%p761_p0), %s227_s13, 512, %s229_s12, %s215_s14, %s979_s21, %s979_s21, %s980_s22  }
  0x18   : > { %p236_p2 = scmp.lt.s32.totalorder %s977_s20, 3 }
  0x1a   : > { %p237_p3 = pnand %p731_p1, %p236_p2 }
  0x1b   : > { %s1085_s24 = sand.u32 (!%p237_p3), 1, %s961_s16  }
  0x1c   : > { %240 = sbr.rel (%p237_p3) target bundleno = 831 (0x33f), region = 36  ;;  %s732_s26 = sshll.u32 (!%p237_p3), %s1085_s24, 5 }
  0x1d   : > { %s243_s6 = scalar_lea.sflag (!%p237_p3), [#allocation3], %s1085_s24  ;;  %s1091_s25 = scalar_lea.vmem (!%p237_p3), [#allocation2], %s732_s26 }
  0x21   : > { %948 = dma.done.wait (%p1058_p8), %s243_s6, 512  }
  0x22   : > { %950 = vsyncadd (%p1058_p8), %s243_s6, 4294966784  ;;  %p291_p4 = scmp.lt.s32.totalorder %s969_s18, 1  ;;  %v981_v0 = vmov 0   ;;  %v982_v1 = vmov 1   ;;  %v983_v6 = vmov 2   ;;  %vm410_vm0 = vcmask 130048  }
  0x23   : > { %826 = vset.pattern.permute.xlu1 %v981_v0  ;;  %825 = vset.pattern.permute.xlu0 %v981_v0  ;;  %s915_s21 = scalar_lea.hbm %s1239_s4, 64 }
  0x24   : > { %s1099_s5 = scalar_select %p291_p4, %s969_s18, 1  ;;  %827 = vset.pattern.permute.xlu2 %v982_v1 }
  0x26   : > { %s751_s7 = sshll.u32 %s1099_s5, 5  ;;  %s736_s27 = sshll.u32 %s1099_s5, 2 }
  0x27   : > { %s298_s10 = scalar_lea.vmem %s1235_s0, %s751_s7  ;;  %s303_s13 = scalar_lea.vmem %s1236_s1, %s736_s27 }
  0x28   : > { %v314_v2 = vld [vmem:[%s298_s10 + $0x10] sm:$0xff]  ;;  %v312_v3 = vld [vmem:[%s298_s10] sm:$0xff]  ;;  %v315_v4 = vld [vmem:[%s298_s10 + $0x18] sm:$0xff]  ;;  %s752_s14 = sshll.u32 %s1099_s5, 3  ;;  %s289_s5 = scalar_lea.vmem [#allocation5], %s732_s26 }
  0x29   : > { %335 = vperm.xlu1 %826, %v314_v2   ;;  %325 = vperm.xlu0 %825, %v312_v3   ;;  %v313_v5 = vld [vmem:[%s298_s10 + $0x8] sm:$0xff]  ;;  %v316_v9 = vld [vmem:[%s303_s13] sm:$0x7]  ;;  %s308_s6 = scalar_lea.vmem %s1237_s2, %s752_s14  ;;  %s754_s7 = sshll.u32 %s969_s18, 5 }
  0x2a   : > { %353 = vperm.xlu2 %827, %v312_v3   ;;  %v368_v10 = vperm.slane %v316_v9, 1  ;;  %v397_v11 = vperm.slane %v316_v9, 2  ;;  %v343_v14 = vperm.slane %v316_v9, 0  ;;  %s591_s10 = scalar_lea.hbm %s1239_s4, %s754_s7  ;;  %s592_s27 = sshll.u32 %s289_s5, 4  ;;  %s593_s27 = int_to_ptr.vmem [resolvable:$true] %s592_s27 }
  0x2b   : > { %s594_s26 = sshll.u32 %s591_s10, 4  ;;  %s578_s18 = scalar_lea.sflag [#allocation4], %s1085_s24  ;;  %s595_s26 = int_to_ptr.hbm [resolvable:$true] %s594_s26 }
  0x2c   : > { %s909_s11 = sshra.s32 %s595_s26, 4  ;;  %s910_s11 = int_to_ptr.hbm [resolvable:$true] %s909_s11 }
  0x2d   : > { %s911_s12 = scalar_lea.hbm %s910_s11, 32  ;;  %p916_p8 = scmp.lt.s32.totalorder %s910_s11, %s1239_s4 }
  0x2e   : > { %p912_p5 = scmp.ne.s32.totalorder %s910_s11, %s911_s12  ;;  %p917_p10 = scmp.lt.s32.totalorder %s915_s21, %s911_s12 }
  0x30   : > { %p913_p6 = pnand %p912_p5, %p1062_p9  ;;  %p918_p13 = por %p917_p10, %p916_p8 }
  0x31   : > { %340 = vperm.xlu1 %826, %v315_v4   ;;  %330 = vperm.xlu0 %825, %v313_v5  }
  0x32   : > { %357 = vperm.xlu2 %827, %v313_v5   ;;  %p914_p7 = pneg %p913_p6 }
  0x34   : > { %p919_p0 = pnand %p918_p13, %p914_p7 }
  0x39   : > { %829 = vset.pattern.permute.xlu1 %v982_v1  ;;  %828 = vset.pattern.permute.xlu0 %v982_v1 }
  0x3a   : > { %365 = vperm.xlu1 %829, %v315_v4   ;;  %361 = vperm.xlu0 %828, %v314_v2  }
  0x3b   : > { %830 = vset.pattern.permute.xlu2 %v983_v6 }
  0x3c   : > { %382 = vperm.xlu2 %830, %v312_v3  }
  0x42   : > { %831 = vset.pattern.permute.xlu1 %v983_v6  ;;  %832 = vset.pattern.permute.xlu0 %v983_v6 }
  0x43   : > { %386 = vperm.xlu1 %831, %v313_v5   ;;  %394 = vperm.xlu0 %832, %v315_v4  }
  0x44   : > { %390 = vperm.xlu2 %830, %v314_v2  }
  0x84   : > { %v354_v7 = vpop.permute.xlu2 %353 }
  0x85   : > { %v369_v13 = vsub.f32 %v354_v7, %v368_v10 }
  0x87   : > { %v373_v18 = vmul.f32 %v369_v13, %v369_v13 }
  0x8c   : > { %v358_v8 = vpop.permute.xlu2 %357 }
  0x8d   : > { %v370_v36 = vsub.f32 %v358_v8, %v368_v10 }
  0x8f   : > { %v374_v40 = vmul.f32 %v370_v36, %v370_v36 }
  0x96   : > { %v383_v12 = vpop.permute.xlu2 %382 }
  0x97   : > { %v398_v15 = vsub.f32 %v383_v12, %v397_v11 }
  0x99   : > { %v402_v21 = vmul.f32 %v398_v15, %v398_v15 }
  0x9b   : > { %v336_v16 = vpop.permute.xlu1 %335  ;;  %v326_v17 = vpop.permute.xlu0 %325 }
  0x9c   : > { %v344_v19 = vsub.f32 %v326_v17, %v343_v14  ;;  %v346_v28 = vsub.f32 %v336_v16, %v343_v14 }
  0x9e   : > { %v348_v20 = vmul.f32 %v344_v19, %v344_v19  ;;  %v391_v27 = vpop.permute.xlu2 %390  ;;  %v350_v33 = vmul.f32 %v346_v28, %v346_v28 }
  0x9f   : > { %v400_v29 = vsub.f32 %v391_v27, %v397_v11 }
  0xa0   : > { %v377_v22 = vadd.f32 %v373_v18, %v348_v20 }
  0xa1   : > { %v404_v35 = vmul.f32 %v400_v29, %v400_v29 }
  0xa2   : > { %v1109_v23 = vadd.f32 %v402_v21, %v377_v22 }
  0xa3   : > { %v341_v24 = vpop.permute.xlu1 %340  ;;  %v331_v25 = vpop.permute.xlu0 %330 }
  0xa4   : > { %v411_v26 = vsel %vm410_vm0, %v1109_v23, inf  ;;  %v345_v37 = vsub.f32 %v331_v25, %v343_v14  ;;  %v347_v47 = vsub.f32 %v341_v24, %v343_v14 }
  0xa5   : > { %412 = vmin.xlane.f32.xlu1 %v411_v26 }
  0xa6   : > { %v349_v41 = vmul.f32 %v345_v37, %v345_v37  ;;  %v351_v53 = vmul.f32 %v347_v47, %v347_v47 }
  0xa8   : > { %v378_v48 = vadd.f32 %v374_v40, %v349_v41 }
  0xac   : > { %v366_v30 = vpop.permute.xlu1 %365  ;;  %v362_v31 = vpop.permute.xlu0 %361 }
  0xad   : > { %v371_v32 = vsub.f32 %v362_v31, %v368_v10  ;;  %v372_v45 = vsub.f32 %v366_v30, %v368_v10 }
  0xaf   : > { %v375_v34 = vmul.f32 %v371_v32, %v371_v32  ;;  %v376_v51 = vmul.f32 %v372_v45, %v372_v45 }
  0xb1   : > { %v379_v38 = vadd.f32 %v375_v34, %v350_v33  ;;  %v380_v56 = vadd.f32 %v376_v51, %v351_v53 }
  0xb3   : > { %v1113_v39 = vadd.f32 %v404_v35, %v379_v38 }
  0xb5   : > { %v387_v42 = vpop.permute.xlu1 %386  ;;  %v395_v43 = vpop.permute.xlu0 %394  ;;  %v417_v44 = vsel %vm410_vm0, %v1113_v39, inf }
  0xb6   : > { %v399_v46 = vsub.f32 %v387_v42, %v397_v11  ;;  %418 = vmin.xlane.f32.xlu0 %v417_v44  ;;  %v401_v50 = vsub.f32 %v395_v43, %v397_v11 }
  0xb8   : > { %v403_v49 = vmul.f32 %v399_v46, %v399_v46  ;;  %v405_v54 = vmul.f32 %v401_v50, %v401_v50 }
  0xba   : > { %v1117_v52 = vadd.f32 %v403_v49, %v378_v48  ;;  %v1121_v57 = vadd.f32 %v405_v54, %v380_v56 }
  0xbc   : > { %v414_v55 = vsel %vm410_vm0, %v1117_v52, inf  ;;  %v420_v58 = vsel %vm410_vm0, %v1121_v57, inf }
  0xbd   : > { %415 = vmin.xlane.f32.xlu2 %v414_v55 }
  0xc5   : > { %421 = vmin.xlane.f32.xlu2 %v420_v58 }
 0x118   : > { %v1125_v59 = vpop.xlane.xlu1 %412 }
 0x119   : > { %vm423_vm1 = vcmp.le.f32.partialorder %v1109_v23, %v1125_v59  ;;  %v463_v28 = vadd.f32 1e-08, %v1125_v59  ;;  %vm487_vm12 = vcmp.eq.f32.partialorder %v1109_v23, %v1125_v59 }
 0x11a   : > { %v427_v60 = vsel %vm423_vm1, 3e+38, %v1109_v23 }
 0x11b   : > { %v431_v61 = vsel %vm410_vm0, %v427_v60, inf }
 0x11c   : > { %432 = vmin.xlane.f32.xlu1 %v431_v61 }
 0x129   : > { %v1131_v62 = vpop.xlane.xlu0 %418 }
 0x12a   : > { %vm425_vm2 = vcmp.le.f32.partialorder %v1113_v39, %v1131_v62  ;;  %v465_v41 = vadd.f32 1e-08, %v1131_v62  ;;  %vm489_vm15 = vcmp.eq.f32.partialorder %v1113_v39, %v1131_v62 }
 0x12b   : > { %v429_v63 = vsel %vm425_vm2, 3e+38, %v1113_v39 }
 0x12c   : > { %v437_v0 = vsel %vm410_vm0, %v429_v63, inf }
 0x12d   : > { %438 = vmin.xlane.f32.xlu1 %v437_v0 }
 0x130   : > { %v416_v1 = vpop.xlane.xlu2 %415 }
 0x131   : > { %vm424_vm3 = vcmp.le.f32.partialorder %v1117_v52, %v416_v1  ;;  %v464_v13 = vadd.f32 1e-08, %v416_v1  ;;  %vm488_vm8 = vcmp.eq.f32.partialorder %v1117_v52, %v416_v1 }
 0x132   : > { %v428_v2 = vsel %vm424_vm3, 3e+38, %v1117_v52 }
 0x133   : > { %v434_v3 = vsel %vm410_vm0, %v428_v2, inf  ;;  %833 = vrcp.f32 %v464_v13 }
 0x134   : > { %435 = vmin.xlane.f32.xlu2 %v434_v3 }
 0x138   : > { %v1140_v4 = vpop.xlane.xlu2 %421 }
 0x139   : > { %vm426_vm4 = vcmp.le.f32.partialorder %v1121_v57, %v1140_v4  ;;  %v834_v18 = vpop.eup %833  ;;  %v466_v54 = vadd.f32 1e-08, %v1140_v4 }
 0x13a   : > { %v430_v5 = vsel %vm426_vm4, 3e+38, %v1121_v57  ;;  %v492_v21 = vsel %vm488_vm8, %v834_v18, 0.0  ;;  %vm490_vm4 = vcmp.eq.f32.partialorder %v1121_v57, %v1140_v4 }
 0x13b   : > { %v440_v6 = vsel %vm410_vm0, %v430_v5, inf }
 0x13c   : > { %441 = vmin.xlane.f32.xlu2 %v440_v6 }
 0x18f   : > { %v433_v7 = vpop.xlane.xlu1 %432 }
 0x190   : > { %vm443_vm5 = vcmp.le.f32.partialorder %v427_v60, %v433_v7  ;;  %v471_v27 = vadd.f32 1e-08, %v433_v7  ;;  %vm495_vm11 = vcmp.eq.f32.partialorder %v1109_v23, %v433_v7 }
 0x191   : > { %v447_v8 = vsel %vm443_vm5, 3e+38, %v427_v60 }
 0x192   : > { %v451_v9 = vsel %vm410_vm0, %v447_v8, inf }
 0x193   : > { %452 = vmin.xlane.f32.xlu0 %v451_v9  ;;  %v753_v9 = vld [vmem:[%s308_s6] sm:$0xff] }
 0x194   : > { %560 = vmatpush.bf16.msra.mxu0 %v753_v9  ;;  %755 = vmatpush.bf16.msra.mxu1 %v753_v9 }
 0x1a0   : > { %v439_v10 = vpop.xlane.xlu1 %438 }
 0x1a1   : > { %vm445_vm6 = vcmp.le.f32.partialorder %v429_v63, %v439_v10  ;;  %v473_v37 = vadd.f32 1e-08, %v439_v10  ;;  %vm497_vm14 = vcmp.eq.f32.partialorder %v1113_v39, %v439_v10 }
 0x1a2   : > { %v449_v11 = vsel %vm445_vm6, 3e+38, %v429_v63  ;;  %vm572_vm6 = vcmask 261120  }
 0x1a3   : > { %v457_v12 = vsel %vm410_vm0, %v449_v11, inf }
 0x1a4   : > { %458 = vmin.xlane.f32.xlu2 %v457_v12 }
 0x1a7   : > { %v436_v14 = vpop.xlane.xlu2 %435 }
 0x1a8   : > { %v472_v15 = vadd.f32 1e-08, %v436_v14  ;;  %vm444_vm7 = vcmp.le.f32.partialorder %v428_v2, %v436_v14  ;;  %vm496_vm9 = vcmp.eq.f32.partialorder %v1117_v52, %v436_v14 }
 0x1a9   : > { %v448_v16 = vsel %vm444_vm7, 3e+38, %v428_v2 }
 0x1aa   : > { %835 = vrcp.f32 %v472_v15  ;;  %v454_v17 = vsel %vm410_vm0, %v448_v16, inf }
 0x1ab   : > { %455 = vmin.xlane.f32.xlu1 %v454_v17  ;;  %837 = vrcp.f32 %v471_v27  ;;  %v321_v27 = vld [vmem:[%s1091_s25 + $0x10] sm:$0xff] }
 0x1ac   : > { %839 = vrcp.f32 %v463_v28 }
 0x1af   : > { %v1149_v19 = vpop.xlane.xlu2 %441 }
 0x1b0   : > { %v836_v20 = vpop.eup %835  ;;  %vm446_vm10 = vcmp.le.f32.partialorder %v430_v5, %v1149_v19  ;;  %v474_v49 = vadd.f32 1e-08, %v1149_v19  ;;  %vm498_vm3 = vcmp.eq.f32.partialorder %v1121_v57, %v1149_v19 }
 0x1b1   : > { %v500_v22 = vsel %vm496_vm9, %v836_v20, 0.0  ;;  %v450_v24 = vsel %vm446_vm10, 3e+38, %v430_v5  ;;  %v838_v31 = vpop.eup %837 }
 0x1b2   : > { %v460_v25 = vsel %vm410_vm0, %v450_v24, inf  ;;  %v504_v26 = vadd.f32 %v500_v22, %v492_v21  ;;  %v840_v32 = vpop.eup %839  ;;  %v499_v33 = vsel %vm495_vm11, %v838_v31, 0.0  ;;  %v319_v22 = vld [vmem:[%s1091_s25] sm:$0xff] }
 0x1b3   : > { %461 = vmin.xlane.f32.xlu0 %v460_v25  ;;  %v491_v34 = vsel %vm487_vm12, %v840_v32, 0.0  ;;  %v322_v32 = vld [vmem:[%s1091_s25 + $0x18] sm:$0xff] }
 0x1b4   : > { %v503_v36 = vadd.f32 %v499_v33, %v491_v34 }
 0x206   : > { %v453_v29 = vpop.xlane.xlu0 %452 }
 0x207   : > { %v479_v30 = vadd.f32 1e-08, %v453_v29  ;;  %vm507_vm13 = vcmp.eq.f32.partialorder %v1109_v23, %v453_v29 }
 0x209   : > { %841 = vrcp.f32 %v479_v30 }
 0x20a   : > { %843 = vrcp.f32 %v473_v37 }
 0x20b   : > { %845 = vrcp.f32 %v465_v41 }
 0x20f   : > { %v842_v35 = vpop.eup %841 }
 0x210   : > { %v511_v38 = vsel %vm507_vm13, %v842_v35, 0.0  ;;  %v844_v45 = vpop.eup %843 }
 0x211   : > { %v1160_v40 = vadd.f32 %v511_v38, %v503_v36  ;;  %v846_v46 = vpop.eup %845  ;;  %v501_v23 = vsel %vm497_vm14, %v844_v45, 0.0 }
 0x212   : > { %v493_v48 = vsel %vm489_vm15, %v846_v46, 0.0 }
 0x213   : > { %v519_v42 = vsel %vm410_vm0, %v1160_v40, 0.0  ;;  %v505_v53 = vadd.f32 %v501_v23, %v493_v48 }
 0x214   : > { %520 = vadd.xlane.f32.xlu1 %v519_v42 }
 0x217   : > { %v459_v43 = vpop.xlane.xlu2 %458 }
 0x218   : > { %v481_v44 = vadd.f32 1e-08, %v459_v43  ;;  %vm509_vm1 = vcmp.eq.f32.partialorder %v1113_v39, %v459_v43 }
 0x21a   : > { %847 = vrcp.f32 %v481_v44 }
 0x21e   : > { %v456_v47 = vpop.xlane.xlu1 %455 }
 0x21f   : > { %v480_v50 = vadd.f32 1e-08, %v456_v47  ;;  %vm508_vm2 = vcmp.eq.f32.partialorder %v1117_v52, %v456_v47 }
 0x220   : > { %v848_v51 = vpop.eup %847 }
 0x221   : > { %v513_v55 = vsel %vm509_vm1, %v848_v51, 0.0  ;;  %849 = vrcp.f32 %v480_v50 }
 0x222   : > { %v517_v56 = vadd.f32 %v513_v55, %v505_v53  ;;  %851 = vrcp.f32 %v474_v49 }
 0x223   : > { %853 = vrcp.f32 %v466_v54 }
 0x224   : > { %v525_v58 = vsel %vm410_vm0, %v517_v56, 0.0 }
 0x225   : > { %526 = vadd.xlane.f32.xlu0 %v525_v58 }
 0x226   : > { %v462_v59 = vpop.xlane.xlu0 %461 }
 0x227   : > { %v850_v60 = vpop.eup %849  ;;  %v482_v61 = vadd.f32 1e-08, %v462_v59  ;;  %vm510_vm5 = vcmp.eq.f32.partialorder %v1121_v57, %v462_v59 }
 0x228   : > { %v512_v62 = vsel %vm508_vm2, %v850_v60, 0.0  ;;  %v852_v63 = vpop.eup %851 }
 0x229   : > { %855 = vrcp.f32 %v482_v61  ;;  %v516_v39 = vadd.f32 %v512_v62, %v504_v26  ;;  %v854_v0 = vpop.eup %853  ;;  %v502_v2 = vsel %vm498_vm3, %v852_v63, 0.0  ;;  %v320_v26 = vld [vmem:[%s1091_s25 + $0x8] sm:$0xff] }
 0x22a   : > { %v494_v3 = vsel %vm490_vm4, %v854_v0, 0.0 }
 0x22b   : > { %v522_v1 = vsel %vm410_vm0, %v516_v39, 0.0  ;;  %v506_v52 = vadd.f32 %v502_v2, %v494_v3 }
 0x22c   : > { %523 = vadd.xlane.f32.xlu2 %v522_v1 }
 0x22f   : > { %v856_v5 = vpop.eup %855 }
 0x230   : > { %v514_v6 = vsel %vm510_vm5, %v856_v5, 0.0 }
 0x231   : > { %v518_v7 = vadd.f32 %v514_v6, %v506_v52 }
 0x233   : > { %v528_v8 = vsel %vm410_vm0, %v518_v7, 0.0 }
 0x234   : > { %529 = vadd.xlane.f32.xlu1 %v528_v8 }
 0x287   : > { %v521_v10 = vpop.xlane.xlu1 %520 }
 0x288   : > { %857 = vrcp.f32 %v521_v10 }
 0x28e   : > { %v858_v57 = vpop.eup %857 }
 0x28f   : > { %v535_v14 = vmul.f32 %v858_v57, %v1160_v40 }
 0x298   : > { %v527_v11 = vpop.xlane.xlu0 %526 }
 0x29f   : > { %v524_v4 = vpop.xlane.xlu2 %523 }
 0x2a0   : > { %859 = vrcp.f32 %v524_v4 }
 0x2a1   : > { %861 = vrcp.f32 %v527_v11 }
 0x2a6   : > { %v860_v12 = vpop.eup %859 }
 0x2a7   : > { %v530_v13 = vpop.xlane.xlu1 %529  ;;  %v536_v15 = vmul.f32 %v860_v12, %v516_v39  ;;  %v862_v17 = vpop.eup %861 }
 0x2a8   : > { %863 = vrcp.f32 %v530_v13  ;;  %v537_v19 = vmul.f32 %v862_v17, %v517_v56 }
 0x2a9   : > { %v539_v16 = vpack.c.bf16 %v536_v15, %v535_v14 }
 0x2ab   : > { %743 = vmatmul.msk.bf16.vlgmr.msra.gmra.mxu0 %vm410_vm0, %v539_v16 }
 0x2ae   : > { %v864_v18 = vpop.eup %863 }
 0x2af   : > { %v538_v20 = vmul.f32 %v864_v18, %v518_v7 }
 0x2b1   : > { %v540_v21 = vpack.c.bf16 %v538_v20, %v537_v19 }
 0x2b3   : > { %744 = vmatmul.msk.bf16.vlgmr.msra.gmra.mxu1 %vm410_vm0, %v540_v21 }
 0x328   : > { %v562_v24 = vpop.f32.mrf.mxu0 }
 0x329   : > { %v563_v25 = vadd.f32 %v562_v24, %v319_v22 }
 0x32b   : > { %573 = vst.msk [vmem:[%s289_s5] sm:$0xff] %vm572_vm6, %v563_v25 }
 0x330   : > { %v564_v28 = vpop.f32.mrf.mxu0  ;;  %v567_v29 = vpop.f32.mrf.mxu1 }
 0x331   : > { %v565_v30 = vadd.f32 %v564_v28, %v320_v26  ;;  %v568_v31 = vadd.f32 %v567_v29, %v321_v27 }
 0x333   : > { %574 = vst.msk [vmem:[%s289_s5 + $0x8] sm:$0xff] %vm572_vm6, %v565_v30 }
 0x334   : > { %575 = vst.msk [vmem:[%s289_s5 + $0x10] sm:$0xff] %vm572_vm6, %v568_v31 }
 0x338   : > { %v569_v33 = vpop.f32.mrf.mxu1 }
 0x339   : > { %v570_v34 = vadd.f32 %v569_v33, %v322_v32 }
 0x33b   : > { %576 = vst.msk [vmem:[%s289_s5 + $0x18] sm:$0xff] %vm572_vm6, %v570_v34 }
 0x33c   : > { %922 = shalt.err (!%p919_p0)
}
 0x33d   : > { %s984_s24 = smov 128   ;;  %s985_s6 = smov 8  }
 0x33e   : > { %758 = dma.vmem_to_hbm [thread:$0]  (%p1062_p9), %s593_s27, 512, %s595_s26, %s578_s18, %s984_s24, %s984_s24, %s985_s6  }
 0x33f PF: > { %s609_s5 = sand.u32 1, %s957_s15   ;;  %p765_p1 = pnand %p727_p12, %p1069_p11 }
 0x340   : > { %s610_s7 = scalar_lea.sflag [#allocation4], %s609_s5 }
 0x341   : > { %p766_p2 = pneg %p765_p1 }
 0x343   : > { %952 = dma.done.wait (%p766_p2), %s610_s7, 512  }
 0x344   : > { %954 = vsyncadd (%p766_p2), %s610_s7, 4294966784  ;;  %s20_s20 = sadd.s32 1, %s977_s20   ;;  %s1244_s15 = smov %s961_s16 }
 0x345   : > { %p17_p3 = scmp.ge.s32.totalorder %s20_s20, 4   ;;  %s1245_s16 = smov %s965_s17 }
 0x346   : > { %s1246_s17 = smov %s1067_s29  ;;  %s1247_s18 = smov %s973_s19 }
 0x347   : > { %s1248_s19 = smov %s1250_s23  ;;  %19 = sbr.rel (!%p17_p3) target bundleno = 6 (0x6), region = 90 }
 0x34c   :  { %616 = vsyncpa [#allocation3], 1 }
 0x34d   :  { %618 = vsyncpa [#allocation3 + $0x1], 1 }
 0x34e   :  { %619 = vsyncpa [#allocation4], 1 }
 0x34f   :  { %621 = vsyncpa [#allocation4 + $0x1], 1 }

</bundles_post_ra>
